<compile_context>
chip_gen: v7x
topology: tpu7x:2x2x1
jax: 0.10.0
libtpu: 0.0.40
codegen_flags: <defaults>
</compile_context>

<pallas_src>
import jax
import jax.numpy as jnp
from jax import lax
from jax.experimental import pallas as pl
from jax.experimental.pallas import tpu as pltpu

# bf16 matmul inputs (native MXU datatype on all current TPU generations);
# accumulation and all gate / cell elementwise math stay f32.
MATMUL_DTYPE = jnp.bfloat16


# ----------------------------------------------------------------------------
# Fused, wavefront-interleaved 2-layer LSTM kernel. Everything VMEM-resident.
# ----------------------------------------------------------------------------
def fused_lstm2_kernel(x_ref, wih1_ref, whh1_ref, b1_ref,
                       wih2_ref, whh2_ref, b2_ref,
                       out_ref, hn_ref):
    # x_ref    : (T*B, E)  bf16, time-major flattened (row = t*B + b)
    # wih1_ref : (E, 4H)   bf16   W_ih^T  layer 1
    # whh1_ref : (H, 4H)   bf16   W_hh^T  layer 1
    # b1_ref   : (1, 4H)   f32    b_ih + b_hh, layer 1
    # wih2_ref : (H, 4H)   bf16   W_ih^T  layer 2
    # whh2_ref : (H, 4H)   bf16   W_hh^T  layer 2
    # b2_ref   : (1, 4H)   f32    b_ih + b_hh, layer 2
    # out_ref  : (T, B, H) f32    layer-2 hidden states (time-major)
    # hn_ref   : (2, B, H) f32    final hidden state per layer
    T, B, H = out_ref.shape
    mdt = whh1_ref.dtype                      # matmul input dtype (bf16)

    # ---- Hoisted layer-1 input projection for ALL timesteps: one big MXU
    # matmul (off the recurrent critical path), bias folded in, kept as a
    # register-resident f32 value (tiny at these shapes).
    pre1 = jnp.dot(x_ref[...], wih1_ref[...],
                   preferred_element_type=jnp.float32) + b1_ref[...]

    # Hold the (small) recurrent weights in registers across the loop.
    whh1 = whh1_ref[...]
    wih2 = wih2_ref[...]
    whh2 = whh2_ref[...]
    b2 = b2_ref[...]

    def cell(gates, c):
        # One full-vreg sigmoid + one full-vreg tanh over (B, 4H), then slice
        # the i/f/g/o groups from the activated values.
        sg = jax.nn.sigmoid(gates)
        th = jnp.tanh(gates)
        i = sg[:, 0 * H:1 * H]
        f = sg[:, 1 * H:2 * H]
        g = th[:, 2 * H:3 * H]
        o = sg[:, 3 * H:4 * H]
        c_new = f * c + i * g
        h_new = o * jnp.tanh(c_new)
        return h_new, c_new

    zeros = jnp.zeros((B, H), jnp.float32)
    h1, c1 = zeros, zeros                     # layer-1 state (time s-1)
    h2, c2 = zeros, zeros                     # layer-2 state (time s-2)

    # Wavefront loop: iteration s does layer-1 time step s and layer-2 time
    # step s-1.  Both consume the layer-1 hidden state h1_{s-1}, i.e. the h1
    # carry *before* this iteration's layer-1 update.  T is small and static,
    # so a fully unrolled Python loop with static boundary guards is used
    # (no runtime predication; live values are a handful of tiny vregs).
    for s in range(T + 1):
        h1_in = h1                            # h1_{s-1}

        # --- two independent recurrent matmuls (can overlap on the MXU) ----
        if s < T:                             # layer-1, time s
            g1 = pre1[s * B:(s + 1) * B, :] + jnp.dot(
                h1_in.astype(mdt), whh1, preferred_element_type=jnp.float32)
        if s >= 1:                            # layer-2, time s-1
            g2 = (jnp.dot(h1_in.astype(mdt), wih2,
                          preferred_element_type=jnp.float32) +
                  jnp.dot(h2.astype(mdt), whh2,
                          preferred_element_type=jnp.float32) + b2)

        # --- two independent gate-nonlinearity chains ----------------------
        if s < T:
            h1, c1 = cell(g1, c1)
        if s >= 1:
            h2, c2 = cell(g2, c2)
            out_ref[s - 1] = h2               # whole per-t tile store

    hn_ref[0] = h1                            # final layer-1 hidden state
    hn_ref[1] = h2                            # final layer-2 hidden state


# ----------------------------------------------------------------------------
# One-time parameter preparation (outside the per-call path):
#   transpose W_ih / W_hh, fold b_ih + b_hh, cast matmul weights to bf16.
# ----------------------------------------------------------------------------
def prepare_params(params):
    assert len(params) == 2, "fused kernel implements num_layers=2"
    (w_ih1, w_hh1, b_ih1, b_hh1), (w_ih2, w_hh2, b_ih2, b_hh2) = params
    H = w_hh1.shape[1]
    wih1_t = jnp.asarray(w_ih1.T, MATMUL_DTYPE)                 # (E, 4H)
    whh1_t = jnp.asarray(w_hh1.T, MATMUL_DTYPE)                 # (H, 4H)
    b1 = (b_ih1 + b_hh1).reshape(1, 4 * H).astype(jnp.float32)  # (1, 4H)
    wih2_t = jnp.asarray(w_ih2.T, MATMUL_DTYPE)                 # (H, 4H)
    whh2_t = jnp.asarray(w_hh2.T, MATMUL_DTYPE)                 # (H, 4H)
    b2 = (b_ih2 + b_hh2).reshape(1, 4 * H).astype(jnp.float32)  # (1, 4H)
    return wih1_t, whh1_t, b1, wih2_t, whh2_t, b2


# ----------------------------------------------------------------------------
# Module forward:
#   out_lstm, (h_n, c_n) = nn.LSTM(E, H, num_layers=2, batch_first=True)(x)
#   return out_lstm, h_n
# ----------------------------------------------------------------------------
@jax.jit
def lstm_forward(x_bte, prepared):
    wih1_t, whh1_t, b1, wih2_t, whh2_t, b2 = prepared
    B, T, E = x_bte.shape
    H = whh1_t.shape[0]

    # batch_first -> time-major, flattened to 2-D (row = t*B + b), bf16.
    x2d = jnp.transpose(x_bte, (1, 0, 2)).reshape(T * B, E).astype(MATMUL_DTYPE)

    vmem = pl.BlockSpec(memory_space=pltpu.MemorySpace.VMEM)
    out_tbh, hn = pl.pallas_call(
        fused_lstm2_kernel,
        in_specs=[vmem] * 7,
        out_specs=[vmem, vmem],
        out_shape=[
            jax.ShapeDtypeStruct((T, B, H), jnp.float32),
            jax.ShapeDtypeStruct((2, B, H), jnp.float32),
        ],
    )(x2d, wih1_t, whh1_t, b1, wih2_t, whh2_t, b2)

    out_lstm = jnp.transpose(out_tbh, (1, 0, 2))   # (B, T, H)
    return out_lstm, hn                            # hn: (num_layers=2, B, H)


# ----------------------------------------------------------------------------
# Pure-JAX f32 reference (exact nn.LSTM math) to sanity-check the kernel.
# ----------------------------------------------------------------------------
def lstm_forward_ref(x_bte, params):
    x = jnp.transpose(x_bte, (1, 0, 2))
    finals = []
    for (w_ih, w_hh, b_ih, b_hh) in params:
        T, B, _ = x.shape
        H = w_ih.shape[0] // 4

        def step(carry, x_t):
            h, c = carry
            gates = x_t @ w_ih.T + h @ w_hh.T + b_ih + b_hh
            i = jax.nn.sigmoid(gates[:, 0 * H:1 * H])
            f = jax.nn.sigmoid(gates[:, 1 * H:2 * H])
            g = jnp.tanh(gates[:, 2 * H:3 * H])
            o = jax.nn.sigmoid(gates[:, 3 * H:4 * H])
            c = f * c + i * g
            h = o * jnp.tanh(c)
            return (h, c), h

        (h_fin, _), outs = lax.scan(
            step, (jnp.zeros((B, H)), jnp.zeros((B, H))), x)
        x = outs
        finals.append(h_fin)
    return jnp.transpose(x, (1, 0, 2)), jnp.stack(finals, axis=0)


def init_params(key, embedding_length, hidden_size, num_layers):
    """Deterministic init mirroring nn.LSTM parameter shapes (PyTorch U(-k, k))."""
    params = []
    k = 1.0 / jnp.sqrt(hidden_size)
    in_dim = embedding_length
    for _ in range(num_layers):
        key, k1, k2, k3, k4 = jax.random.split(key, 5)
        w_ih = jax.random.uniform(k1, (4 * hidden_size, in_dim),
                                  jnp.float32, -k, k)
        w_hh = jax.random.uniform(k2, (4 * hidden_size, hidden_size),
                                  jnp.float32, -k, k)
        b_ih = jax.random.uniform(k3, (4 * hidden_size,), jnp.float32, -k, k)
        b_hh = jax.random.uniform(k4, (4 * hidden_size,), jnp.float32, -k, k)
        params.append((w_ih, w_hh, b_ih, b_hh))
        in_dim = hidden_size
    return params


if __name__ == "__main__":
    # input_sequence: (batch, seq, embedding_length), batch_first=True
    batch, seq, emb, hidden, num_layers = 2, 8, 16, 32, 2

    key = jax.random.PRNGKey(0)
    key, xk = jax.random.split(key)
    x = jax.random.normal(xk, (batch, seq, emb), jnp.float32)
    params = init_params(key, emb, hidden, num_layers)
    prepared = prepare_params(params)          # one-time weight prep (bf16, W^T, folded bias)

    out_lstm, final_h = lstm_forward(x, prepared)
    jax.block_until_ready((out_lstm, final_h))

    # Cross-check against the exact f32 reference (tolerance loosened for the
    # bf16 matmul-input path, per review).
    out_ref, final_ref = lstm_forward_ref(x, params)
    assert out_lstm.shape == (batch, seq, hidden)
    assert final_h.shape == (num_layers, batch, hidden)
    assert jnp.allclose(out_lstm, out_ref, atol=5e-2, rtol=5e-2)
    assert jnp.allclose(final_h, final_ref, atol=5e-2, rtol=5e-2)

    print("KERNEL_OK")
</pallas_src>

<mosaic_0001>
module attributes {stable_mosaic.version = 11 : i64} {
  func.func @fused_lstm2_kernel(%arg0: memref<16x16xbf16, #tpu.memory_space<vmem>>, %arg1: memref<16x128xbf16, #tpu.memory_space<vmem>>, %arg2: memref<32x128xbf16, #tpu.memory_space<vmem>>, %arg3: memref<1x128xf32, #tpu.memory_space<vmem>>, %arg4: memref<32x128xbf16, #tpu.memory_space<vmem>>, %arg5: memref<32x128xbf16, #tpu.memory_space<vmem>>, %arg6: memref<1x128xf32, #tpu.memory_space<vmem>>, %arg7: memref<8x2x32xf32, #tpu.memory_space<vmem>>, %arg8: memref<2x2x32xf32, #tpu.memory_space<vmem>>) attributes {dimension_semantics = [], scalar_prefetch = 0 : i64, scratch_operands = 0 : i64, tpu.core_type = #tpu.core_type<tc>} {
    %c0 = arith.constant 0 : index
    %c0_0 = arith.constant 0 : index
    %0 = vector.load %arg0[%c0, %c0_0] : memref<16x16xbf16, #tpu.memory_space<vmem>>, vector<16x16xbf16>
    %c0_1 = arith.constant 0 : index
    %c0_2 = arith.constant 0 : index
    %1 = vector.load %arg1[%c0_1, %c0_2] : memref<16x128xbf16, #tpu.memory_space<vmem>>, vector<16x128xbf16>
    %cst = arith.constant dense<0.000000e+00> : vector<16x128xf32>
    %2 = tpu.matmul %0, %1, %cst {dimension_numbers = #tpu.dot_dimension_numbers<[1], [0], [0], [1], [0, 0, 1, 1], [], []>} : vector<16x16xbf16>, vector<16x128xbf16>, vector<16x128xf32> -> vector<16x128xf32>
    %c0_3 = arith.constant 0 : index
    %c0_4 = arith.constant 0 : index
    %3 = vector.load %arg3[%c0_3, %c0_4] : memref<1x128xf32, #tpu.memory_space<vmem>>, vector<1x128xf32>
    %4 = vector.broadcast %3 : vector<1x128xf32> to vector<16x128xf32>
    %5 = arith.addf %2, %4 : vector<16x128xf32>
    %c0_5 = arith.constant 0 : index
    %c0_6 = arith.constant 0 : index
    %6 = vector.load %arg2[%c0_5, %c0_6] : memref<32x128xbf16, #tpu.memory_space<vmem>>, vector<32x128xbf16>
    %c0_7 = arith.constant 0 : index
    %c0_8 = arith.constant 0 : index
    %7 = vector.load %arg4[%c0_7, %c0_8] : memref<32x128xbf16, #tpu.memory_space<vmem>>, vector<32x128xbf16>
    %c0_9 = arith.constant 0 : index
    %c0_10 = arith.constant 0 : index
    %8 = vector.load %arg5[%c0_9, %c0_10] : memref<32x128xbf16, #tpu.memory_space<vmem>>, vector<32x128xbf16>
    %c0_11 = arith.constant 0 : index
    %c0_12 = arith.constant 0 : index
    %9 = vector.load %arg6[%c0_11, %c0_12] : memref<1x128xf32, #tpu.memory_space<vmem>>, vector<1x128xf32>
    %cst_13 = arith.constant 0.000000e+00 : f32
    %10 = vector.broadcast %cst_13 : f32 to vector<2x32xf32>
    %11 = vector.extract_strided_slice %5 {offsets = [0, 0], sizes = [2, 128], strides = [1, 1]} : vector<16x128xf32> to vector<2x128xf32>
    %12 = arith.truncf %10 : vector<2x32xf32> to vector<2x32xbf16>
    %cst_14 = arith.constant dense<0.000000e+00> : vector<2x128xf32>
    %13 = tpu.matmul %12, %6, %cst_14 {dimension_numbers = #tpu.dot_dimension_numbers<[1], [0], [0], [1], [0, 0, 1, 1], [], []>} : vector<2x32xbf16>, vector<32x128xbf16>, vector<2x128xf32> -> vector<2x128xf32>
    %14 = arith.addf %11, %13 : vector<2x128xf32>
    %15 = arith.negf %14 : vector<2x128xf32>
    %16 = math.exp %15 : vector<2x128xf32>
    %cst_15 = arith.constant 1.000000e+00 : f32
    %17 = vector.broadcast %cst_15 : f32 to vector<2x128xf32>
    %18 = arith.addf %17, %16 : vector<2x128xf32>
    %19 = arith.divf %17, %18 : vector<2x128xf32>
    %20 = math.tanh %14 : vector<2x128xf32>
    %21 = vector.extract_strided_slice %19 {offsets = [0, 0], sizes = [2, 32], strides = [1, 1]} : vector<2x128xf32> to vector<2x32xf32>
    %22 = vector.extract_strided_slice %19 {offsets = [0, 32], sizes = [2, 32], strides = [1, 1]} : vector<2x128xf32> to vector<2x32xf32>
    %23 = vector.extract_strided_slice %20 {offsets = [0, 64], sizes = [2, 32], strides = [1, 1]} : vector<2x128xf32> to vector<2x32xf32>
    %24 = vector.extract_strided_slice %19 {offsets = [0, 96], sizes = [2, 32], strides = [1, 1]} : vector<2x128xf32> to vector<2x32xf32>
    %25 = arith.mulf %22, %10 : vector<2x32xf32>
    %26 = arith.mulf %21, %23 : vector<2x32xf32>
    %27 = arith.addf %25, %26 : vector<2x32xf32>
    %28 = math.tanh %27 : vector<2x32xf32>
    %29 = arith.mulf %24, %28 : vector<2x32xf32>
    %30 = vector.extract_strided_slice %5 {offsets = [2, 0], sizes = [2, 128], strides = [1, 1]} : vector<16x128xf32> to vector<2x128xf32>
    %31 = arith.truncf %29 : vector<2x32xf32> to vector<2x32xbf16>
    %cst_16 = arith.constant dense<0.000000e+00> : vector<2x128xf32>
    %32 = tpu.matmul %31, %6, %cst_16 {dimension_numbers = #tpu.dot_dimension_numbers<[1], [0], [0], [1], [0, 0, 1, 1], [], []>} : vector<2x32xbf16>, vector<32x128xbf16>, vector<2x128xf32> -> vector<2x128xf32>
    %33 = arith.addf %30, %32 : vector<2x128xf32>
    %34 = arith.truncf %29 : vector<2x32xf32> to vector<2x32xbf16>
    %cst_17 = arith.constant dense<0.000000e+00> : vector<2x128xf32>
    %35 = tpu.matmul %34, %7, %cst_17 {dimension_numbers = #tpu.dot_dimension_numbers<[1], [0], [0], [1], [0, 0, 1, 1], [], []>} : vector<2x32xbf16>, vector<32x128xbf16>, vector<2x128xf32> -> vector<2x128xf32>
    %36 = arith.truncf %10 : vector<2x32xf32> to vector<2x32xbf16>
    %cst_18 = arith.constant dense<0.000000e+00> : vector<2x128xf32>
    %37 = tpu.matmul %36, %8, %cst_18 {dimension_numbers = #tpu.dot_dimension_numbers<[1], [0], [0], [1], [0, 0, 1, 1], [], []>} : vector<2x32xbf16>, vector<32x128xbf16>, vector<2x128xf32> -> vector<2x128xf32>
    %38 = arith.addf %35, %37 : vector<2x128xf32>
    %39 = vector.broadcast %9 : vector<1x128xf32> to vector<2x128xf32>
    %40 = arith.addf %38, %39 : vector<2x128xf32>
    %41 = arith.negf %33 : vector<2x128xf32>
    %42 = math.exp %41 : vector<2x128xf32>
    %cst_19 = arith.constant 1.000000e+00 : f32
    %43 = vector.broadcast %cst_19 : f32 to vector<2x128xf32>
    %44 = arith.addf %43, %42 : vector<2x128xf32>
    %45 = arith.divf %43, %44 : vector<2x128xf32>
    %46 = math.tanh %33 : vector<2x128xf32>
    %47 = vector.extract_strided_slice %45 {offsets = [0, 0], sizes = [2, 32], strides = [1, 1]} : vector<2x128xf32> to vector<2x32xf32>
    %48 = vector.extract_strided_slice %45 {offsets = [0, 32], sizes = [2, 32], strides = [1, 1]} : vector<2x128xf32> to vector<2x32xf32>
    %49 = vector.extract_strided_slice %46 {offsets = [0, 64], sizes = [2, 32], strides = [1, 1]} : vector<2x128xf32> to vector<2x32xf32>
    %50 = vector.extract_strided_slice %45 {offsets = [0, 96], sizes = [2, 32], strides = [1, 1]} : vector<2x128xf32> to vector<2x32xf32>
    %51 = arith.mulf %48, %27 : vector<2x32xf32>
    %52 = arith.mulf %47, %49 : vector<2x32xf32>
    %53 = arith.addf %51, %52 : vector<2x32xf32>
    %54 = math.tanh %53 : vector<2x32xf32>
    %55 = arith.mulf %50, %54 : vector<2x32xf32>
    %56 = arith.negf %40 : vector<2x128xf32>
    %57 = math.exp %56 : vector<2x128xf32>
    %cst_20 = arith.constant 1.000000e+00 : f32
    %58 = vector.broadcast %cst_20 : f32 to vector<2x128xf32>
    %59 = arith.addf %58, %57 : vector<2x128xf32>
    %60 = arith.divf %58, %59 : vector<2x128xf32>
    %61 = math.tanh %40 : vector<2x128xf32>
    %62 = vector.extract_strided_slice %60 {offsets = [0, 0], sizes = [2, 32], strides = [1, 1]} : vector<2x128xf32> to vector<2x32xf32>
    %63 = vector.extract_strided_slice %60 {offsets = [0, 32], sizes = [2, 32], strides = [1, 1]} : vector<2x128xf32> to vector<2x32xf32>
    %64 = vector.extract_strided_slice %61 {offsets = [0, 64], sizes = [2, 32], strides = [1, 1]} : vector<2x128xf32> to vector<2x32xf32>
    %65 = vector.extract_strided_slice %60 {offsets = [0, 96], sizes = [2, 32], strides = [1, 1]} : vector<2x128xf32> to vector<2x32xf32>
    %66 = arith.mulf %63, %10 : vector<2x32xf32>
    %67 = arith.mulf %62, %64 : vector<2x32xf32>
    %68 = arith.addf %66, %67 : vector<2x32xf32>
    %69 = math.tanh %68 : vector<2x32xf32>
    %70 = arith.mulf %65, %69 : vector<2x32xf32>
    %c0_21 = arith.constant 0 : index
    %c0_22 = arith.constant 0 : index
    %c0_23 = arith.constant 0 : index
    %71 = vector.load %arg7[%c0_21, %c0_22, %c0_23] : memref<8x2x32xf32, #tpu.memory_space<vmem>>, vector<1x2x32xf32>
    %72 = vector.shape_cast %71 : vector<1x2x32xf32> to vector<2x32xf32>
    %73 = vector.shape_cast %70 : vector<2x32xf32> to vector<1x2x32xf32>
    tpu.vector_store %arg7[%c0_21, %c0_22, %c0_23], %73 {strides = array<i32>} : memref<8x2x32xf32, #tpu.memory_space<vmem>>, vector<1x2x32xf32>,
    %74 = vector.extract_strided_slice %5 {offsets = [4, 0], sizes = [2, 128], strides = [1, 1]} : vector<16x128xf32> to vector<2x128xf32>
    %75 = arith.truncf %55 : vector<2x32xf32> to vector<2x32xbf16>
    %cst_24 = arith.constant dense<0.000000e+00> : vector<2x128xf32>
    %76 = tpu.matmul %75, %6, %cst_24 {dimension_numbers = #tpu.dot_dimension_numbers<[1], [0], [0], [1], [0, 0, 1, 1], [], []>} : vector<2x32xbf16>, vector<32x128xbf16>, vector<2x128xf32> -> vector<2x128xf32>
    %77 = arith.addf %74, %76 : vector<2x128xf32>
    %78 = arith.truncf %55 : vector<2x32xf32> to vector<2x32xbf16>
    %cst_25 = arith.constant dense<0.000000e+00> : vector<2x128xf32>
    %79 = tpu.matmul %78, %7, %cst_25 {dimension_numbers = #tpu.dot_dimension_numbers<[1], [0], [0], [1], [0, 0, 1, 1], [], []>} : vector<2x32xbf16>, vector<32x128xbf16>, vector<2x128xf32> -> vector<2x128xf32>
    %80 = arith.truncf %70 : vector<2x32xf32> to vector<2x32xbf16>
    %cst_26 = arith.constant dense<0.000000e+00> : vector<2x128xf32>
    %81 = tpu.matmul %80, %8, %cst_26 {dimension_numbers = #tpu.dot_dimension_numbers<[1], [0], [0], [1], [0, 0, 1, 1], [], []>} : vector<2x32xbf16>, vector<32x128xbf16>, vector<2x128xf32> -> vector<2x128xf32>
    %82 = arith.addf %79, %81 : vector<2x128xf32>
    %83 = vector.broadcast %9 : vector<1x128xf32> to vector<2x128xf32>
    %84 = arith.addf %82, %83 : vector<2x128xf32>
    %85 = arith.negf %77 : vector<2x128xf32>
    %86 = math.exp %85 : vector<2x128xf32>
    %cst_27 = arith.constant 1.000000e+00 : f32
    %87 = vector.broadcast %cst_27 : f32 to vector<2x128xf32>
    %88 = arith.addf %87, %86 : vector<2x128xf32>
    %89 = arith.divf %87, %88 : vector<2x128xf32>
    %90 = math.tanh %77 : vector<2x128xf32>
    %91 = vector.extract_strided_slice %89 {offsets = [0, 0], sizes = [2, 32], strides = [1, 1]} : vector<2x128xf32> to vector<2x32xf32>
    %92 = vector.extract_strided_slice %89 {offsets = [0, 32], sizes = [2, 32], strides = [1, 1]} : vector<2x128xf32> to vector<2x32xf32>
    %93 = vector.extract_strided_slice %90 {offsets = [0, 64], sizes = [2, 32], strides = [1, 1]} : vector<2x128xf32> to vector<2x32xf32>
    %94 = vector.extract_strided_slice %89 {offsets = [0, 96], sizes = [2, 32], strides = [1, 1]} : vector<2x128xf32> to vector<2x32xf32>
    %95 = arith.mulf %92, %53 : vector<2x32xf32>
    %96 = arith.mulf %91, %93 : vector<2x32xf32>
    %97 = arith.addf %95, %96 : vector<2x32xf32>
    %98 = math.tanh %97 : vector<2x32xf32>
    %99 = arith.mulf %94, %98 : vector<2x32xf32>
    %100 = arith.negf %84 : vector<2x128xf32>
    %101 = math.exp %100 : vector<2x128xf32>
    %cst_28 = arith.constant 1.000000e+00 : f32
    %102 = vector.broadcast %cst_28 : f32 to vector<2x128xf32>
    %103 = arith.addf %102, %101 : vector<2x128xf32>
    %104 = arith.divf %102, %103 : vector<2x128xf32>
    %105 = math.tanh %84 : vector<2x128xf32>
    %106 = vector.extract_strided_slice %104 {offsets = [0, 0], sizes = [2, 32], strides = [1, 1]} : vector<2x128xf32> to vector<2x32xf32>
    %107 = vector.extract_strided_slice %104 {offsets = [0, 32], sizes = [2, 32], strides = [1, 1]} : vector<2x128xf32> to vector<2x32xf32>
    %108 = vector.extract_strided_slice %105 {offsets = [0, 64], sizes = [2, 32], strides = [1, 1]} : vector<2x128xf32> to vector<2x32xf32>
    %109 = vector.extract_strided_slice %104 {offsets = [0, 96], sizes = [2, 32], strides = [1, 1]} : vector<2x128xf32> to vector<2x32xf32>
    %110 = arith.mulf %107, %68 : vector<2x32xf32>
    %111 = arith.mulf %106, %108 : vector<2x32xf32>
    %112 = arith.addf %110, %111 : vector<2x32xf32>
    %113 = math.tanh %112 : vector<2x32xf32>
    %114 = arith.mulf %109, %113 : vector<2x32xf32>
    %c1 = arith.constant 1 : index
    %c0_29 = arith.constant 0 : index
    %c0_30 = arith.constant 0 : index
    %115 = vector.load %arg7[%c1, %c0_29, %c0_30] : memref<8x2x32xf32, #tpu.memory_space<vmem>>, vector<1x2x32xf32>
    %116 = vector.shape_cast %115 : vector<1x2x32xf32> to vector<2x32xf32>
    %117 = vector.shape_cast %114 : vector<2x32xf32> to vector<1x2x32xf32>
    tpu.vector_store %arg7[%c1, %c0_29, %c0_30], %117 {strides = array<i32>} : memref<8x2x32xf32, #tpu.memory_space<vmem>>, vector<1x2x32xf32>,
    %118 = vector.extract_strided_slice %5 {offsets = [6, 0], sizes = [2, 128], strides = [1, 1]} : vector<16x128xf32> to vector<2x128xf32>
    %119 = arith.truncf %99 : vector<2x32xf32> to vector<2x32xbf16>
    %cst_31 = arith.constant dense<0.000000e+00> : vector<2x128xf32>
    %120 = tpu.matmul %119, %6, %cst_31 {dimension_numbers = #tpu.dot_dimension_numbers<[1], [0], [0], [1], [0, 0, 1, 1], [], []>} : vector<2x32xbf16>, vector<32x128xbf16>, vector<2x128xf32> -> vector<2x128xf32>
    %121 = arith.addf %118, %120 : vector<2x128xf32>
    %122 = arith.truncf %99 : vector<2x32xf32> to vector<2x32xbf16>
    %cst_32 = arith.constant dense<0.000000e+00> : vector<2x128xf32>
    %123 = tpu.matmul %122, %7, %cst_32 {dimension_numbers = #tpu.dot_dimension_numbers<[1], [0], [0], [1], [0, 0, 1, 1], [], []>} : vector<2x32xbf16>, vector<32x128xbf16>, vector<2x128xf32> -> vector<2x128xf32>
    %124 = arith.truncf %114 : vector<2x32xf32> to vector<2x32xbf16>
    %cst_33 = arith.constant dense<0.000000e+00> : vector<2x128xf32>
    %125 = tpu.matmul %124, %8, %cst_33 {dimension_numbers = #tpu.dot_dimension_numbers<[1], [0], [0], [1], [0, 0, 1, 1], [], []>} : vector<2x32xbf16>, vector<32x128xbf16>, vector<2x128xf32> -> vector<2x128xf32>
    %126 = arith.addf %123, %125 : vector<2x128xf32>
    %127 = vector.broadcast %9 : vector<1x128xf32> to vector<2x128xf32>
    %128 = arith.addf %126, %127 : vector<2x128xf32>
    %129 = arith.negf %121 : vector<2x128xf32>
    %130 = math.exp %129 : vector<2x128xf32>
    %cst_34 = arith.constant 1.000000e+00 : f32
    %131 = vector.broadcast %cst_34 : f32 to vector<2x128xf32>
    %132 = arith.addf %131, %130 : vector<2x128xf32>
    %133 = arith.divf %131, %132 : vector<2x128xf32>
    %134 = math.tanh %121 : vector<2x128xf32>
    %135 = vector.extract_strided_slice %133 {offsets = [0, 0], sizes = [2, 32], strides = [1, 1]} : vector<2x128xf32> to vector<2x32xf32>
    %136 = vector.extract_strided_slice %133 {offsets = [0, 32], sizes = [2, 32], strides = [1, 1]} : vector<2x128xf32> to vector<2x32xf32>
    %137 = vector.extract_strided_slice %134 {offsets = [0, 64], sizes = [2, 32], strides = [1, 1]} : vector<2x128xf32> to vector<2x32xf32>
    %138 = vector.extract_strided_slice %133 {offsets = [0, 96], sizes = [2, 32], strides = [1, 1]} : vector<2x128xf32> to vector<2x32xf32>
    %139 = arith.mulf %136, %97 : vector<2x32xf32>
    %140 = arith.mulf %135, %137 : vector<2x32xf32>
    %141 = arith.addf %139, %140 : vector<2x32xf32>
    %142 = math.tanh %141 : vector<2x32xf32>
    %143 = arith.mulf %138, %142 : vector<2x32xf32>
    %144 = arith.negf %128 : vector<2x128xf32>
    %145 = math.exp %144 : vector<2x128xf32>
    %cst_35 = arith.constant 1.000000e+00 : f32
    %146 = vector.broadcast %cst_35 : f32 to vector<2x128xf32>
    %147 = arith.addf %146, %145 : vector<2x128xf32>
    %148 = arith.divf %146, %147 : vector<2x128xf32>
    %149 = math.tanh %128 : vector<2x128xf32>
    %150 = vector.extract_strided_slice %148 {offsets = [0, 0], sizes = [2, 32], strides = [1, 1]} : vector<2x128xf32> to vector<2x32xf32>
    %151 = vector.extract_strided_slice %148 {offsets = [0, 32], sizes = [2, 32], strides = [1, 1]} : vector<2x128xf32> to vector<2x32xf32>
    %152 = vector.extract_strided_slice %149 {offsets = [0, 64], sizes = [2, 32], strides = [1, 1]} : vector<2x128xf32> to vector<2x32xf32>
    %153 = vector.extract_strided_slice %148 {offsets = [0, 96], sizes = [2, 32], strides = [1, 1]} : vector<2x128xf32> to vector<2x32xf32>
    %154 = arith.mulf %151, %112 : vector<2x32xf32>
    %155 = arith.mulf %150, %152 : vector<2x32xf32>
    %156 = arith.addf %154, %155 : vector<2x32xf32>
    %157 = math.tanh %156 : vector<2x32xf32>
    %158 = arith.mulf %153, %157 : vector<2x32xf32>
    %c2 = arith.constant 2 : index
    %c0_36 = arith.constant 0 : index
    %c0_37 = arith.constant 0 : index
    %159 = vector.load %arg7[%c2, %c0_36, %c0_37] : memref<8x2x32xf32, #tpu.memory_space<vmem>>, vector<1x2x32xf32>
    %160 = vector.shape_cast %159 : vector<1x2x32xf32> to vector<2x32xf32>
    %161 = vector.shape_cast %158 : vector<2x32xf32> to vector<1x2x32xf32>
    tpu.vector_store %arg7[%c2, %c0_36, %c0_37], %161 {strides = array<i32>} : memref<8x2x32xf32, #tpu.memory_space<vmem>>, vector<1x2x32xf32>,
    %162 = vector.extract_strided_slice %5 {offsets = [8, 0], sizes = [2, 128], strides = [1, 1]} : vector<16x128xf32> to vector<2x128xf32>
    %163 = arith.truncf %143 : vector<2x32xf32> to vector<2x32xbf16>
    %cst_38 = arith.constant dense<0.000000e+00> : vector<2x128xf32>
    %164 = tpu.matmul %163, %6, %cst_38 {dimension_numbers = #tpu.dot_dimension_numbers<[1], [0], [0], [1], [0, 0, 1, 1], [], []>} : vector<2x32xbf16>, vector<32x128xbf16>, vector<2x128xf32> -> vector<2x128xf32>
    %165 = arith.addf %162, %164 : vector<2x128xf32>
    %166 = arith.truncf %143 : vector<2x32xf32> to vector<2x32xbf16>
    %cst_39 = arith.constant dense<0.000000e+00> : vector<2x128xf32>
    %167 = tpu.matmul %166, %7, %cst_39 {dimension_numbers = #tpu.dot_dimension_numbers<[1], [0], [0], [1], [0, 0, 1, 1], [], []>} : vector<2x32xbf16>, vector<32x128xbf16>, vector<2x128xf32> -> vector<2x128xf32>
    %168 = arith.truncf %158 : vector<2x32xf32> to vector<2x32xbf16>
    %cst_40 = arith.constant dense<0.000000e+00> : vector<2x128xf32>
    %169 = tpu.matmul %168, %8, %cst_40 {dimension_numbers = #tpu.dot_dimension_numbers<[1], [0], [0], [1], [0, 0, 1, 1], [], []>} : vector<2x32xbf16>, vector<32x128xbf16>, vector<2x128xf32> -> vector<2x128xf32>
    %170 = arith.addf %167, %169 : vector<2x128xf32>
    %171 = vector.broadcast %9 : vector<1x128xf32> to vector<2x128xf32>
    %172 = arith.addf %170, %171 : vector<2x128xf32>
    %173 = arith.negf %165 : vector<2x128xf32>
    %174 = math.exp %173 : vector<2x128xf32>
    %cst_41 = arith.constant 1.000000e+00 : f32
    %175 = vector.broadcast %cst_41 : f32 to vector<2x128xf32>
    %176 = arith.addf %175, %174 : vector<2x128xf32>
    %177 = arith.divf %175, %176 : vector<2x128xf32>
    %178 = math.tanh %165 : vector<2x128xf32>
    %179 = vector.extract_strided_slice %177 {offsets = [0, 0], sizes = [2, 32], strides = [1, 1]} : vector<2x128xf32> to vector<2x32xf32>
    %180 = vector.extract_strided_slice %177 {offsets = [0, 32], sizes = [2, 32], strides = [1, 1]} : vector<2x128xf32> to vector<2x32xf32>
    %181 = vector.extract_strided_slice %178 {offsets = [0, 64], sizes = [2, 32], strides = [1, 1]} : vector<2x128xf32> to vector<2x32xf32>
    %182 = vector.extract_strided_slice %177 {offsets = [0, 96], sizes = [2, 32], strides = [1, 1]} : vector<2x128xf32> to vector<2x32xf32>
    %183 = arith.mulf %180, %141 : vector<2x32xf32>
    %184 = arith.mulf %179, %181 : vector<2x32xf32>
    %185 = arith.addf %183, %184 : vector<2x32xf32>
    %186 = math.tanh %185 : vector<2x32xf32>
    %187 = arith.mulf %182, %186 : vector<2x32xf32>
    %188 = arith.negf %172 : vector<2x128xf32>
    %189 = math.exp %188 : vector<2x128xf32>
    %cst_42 = arith.constant 1.000000e+00 : f32
    %190 = vector.broadcast %cst_42 : f32 to vector<2x128xf32>
    %191 = arith.addf %190, %189 : vector<2x128xf32>
    %192 = arith.divf %190, %191 : vector<2x128xf32>
    %193 = math.tanh %172 : vector<2x128xf32>
    %194 = vector.extract_strided_slice %192 {offsets = [0, 0], sizes = [2, 32], strides = [1, 1]} : vector<2x128xf32> to vector<2x32xf32>
    %195 = vector.extract_strided_slice %192 {offsets = [0, 32], sizes = [2, 32], strides = [1, 1]} : vector<2x128xf32> to vector<2x32xf32>
    %196 = vector.extract_strided_slice %193 {offsets = [0, 64], sizes = [2, 32], strides = [1, 1]} : vector<2x128xf32> to vector<2x32xf32>
    %197 = vector.extract_strided_slice %192 {offsets = [0, 96], sizes = [2, 32], strides = [1, 1]} : vector<2x128xf32> to vector<2x32xf32>
    %198 = arith.mulf %195, %156 : vector<2x32xf32>
    %199 = arith.mulf %194, %196 : vector<2x32xf32>
    %200 = arith.addf %198, %199 : vector<2x32xf32>
    %201 = math.tanh %200 : vector<2x32xf32>
    %202 = arith.mulf %197, %201 : vector<2x32xf32>
    %c3 = arith.constant 3 : index
    %c0_43 = arith.constant 0 : index
    %c0_44 = arith.constant 0 : index
    %203 = vector.load %arg7[%c3, %c0_43, %c0_44] : memref<8x2x32xf32, #tpu.memory_space<vmem>>, vector<1x2x32xf32>
    %204 = vector.shape_cast %203 : vector<1x2x32xf32> to vector<2x32xf32>
    %205 = vector.shape_cast %202 : vector<2x32xf32> to vector<1x2x32xf32>
    tpu.vector_store %arg7[%c3, %c0_43, %c0_44], %205 {strides = array<i32>} : memref<8x2x32xf32, #tpu.memory_space<vmem>>, vector<1x2x32xf32>,
    %206 = vector.extract_strided_slice %5 {offsets = [10, 0], sizes = [2, 128], strides = [1, 1]} : vector<16x128xf32> to vector<2x128xf32>
    %207 = arith.truncf %187 : vector<2x32xf32> to vector<2x32xbf16>
    %cst_45 = arith.constant dense<0.000000e+00> : vector<2x128xf32>
    %208 = tpu.matmul %207, %6, %cst_45 {dimension_numbers = #tpu.dot_dimension_numbers<[1], [0], [0], [1], [0, 0, 1, 1], [], []>} : vector<2x32xbf16>, vector<32x128xbf16>, vector<2x128xf32> -> vector<2x128xf32>
    %209 = arith.addf %206, %208 : vector<2x128xf32>
    %210 = arith.truncf %187 : vector<2x32xf32> to vector<2x32xbf16>
    %cst_46 = arith.constant dense<0.000000e+00> : vector<2x128xf32>
    %211 = tpu.matmul %210, %7, %cst_46 {dimension_numbers = #tpu.dot_dimension_numbers<[1], [0], [0], [1], [0, 0, 1, 1], [], []>} : vector<2x32xbf16>, vector<32x128xbf16>, vector<2x128xf32> -> vector<2x128xf32>
    %212 = arith.truncf %202 : vector<2x32xf32> to vector<2x32xbf16>
    %cst_47 = arith.constant dense<0.000000e+00> : vector<2x128xf32>
    %213 = tpu.matmul %212, %8, %cst_47 {dimension_numbers = #tpu.dot_dimension_numbers<[1], [0], [0], [1], [0, 0, 1, 1], [], []>} : vector<2x32xbf16>, vector<32x128xbf16>, vector<2x128xf32> -> vector<2x128xf32>
    %214 = arith.addf %211, %213 : vector<2x128xf32>
    %215 = vector.broadcast %9 : vector<1x128xf32> to vector<2x128xf32>
    %216 = arith.addf %214, %215 : vector<2x128xf32>
    %217 = arith.negf %209 : vector<2x128xf32>
    %218 = math.exp %217 : vector<2x128xf32>
    %cst_48 = arith.constant 1.000000e+00 : f32
    %219 = vector.broadcast %cst_48 : f32 to vector<2x128xf32>
    %220 = arith.addf %219, %218 : vector<2x128xf32>
    %221 = arith.divf %219, %220 : vector<2x128xf32>
    %222 = math.tanh %209 : vector<2x128xf32>
    %223 = vector.extract_strided_slice %221 {offsets = [0, 0], sizes = [2, 32], strides = [1, 1]} : vector<2x128xf32> to vector<2x32xf32>
    %224 = vector.extract_strided_slice %221 {offsets = [0, 32], sizes = [2, 32], strides = [1, 1]} : vector<2x128xf32> to vector<2x32xf32>
    %225 = vector.extract_strided_slice %222 {offsets = [0, 64], sizes = [2, 32], strides = [1, 1]} : vector<2x128xf32> to vector<2x32xf32>
    %226 = vector.extract_strided_slice %221 {offsets = [0, 96], sizes = [2, 32], strides = [1, 1]} : vector<2x128xf32> to vector<2x32xf32>
    %227 = arith.mulf %224, %185 : vector<2x32xf32>
    %228 = arith.mulf %223, %225 : vector<2x32xf32>
    %229 = arith.addf %227, %228 : vector<2x32xf32>
    %230 = math.tanh %229 : vector<2x32xf32>
    %231 = arith.mulf %226, %230 : vector<2x32xf32>
    %232 = arith.negf %216 : vector<2x128xf32>
    %233 = math.exp %232 : vector<2x128xf32>
    %cst_49 = arith.constant 1.000000e+00 : f32
    %234 = vector.broadcast %cst_49 : f32 to vector<2x128xf32>
    %235 = arith.addf %234, %233 : vector<2x128xf32>
    %236 = arith.divf %234, %235 : vector<2x128xf32>
    %237 = math.tanh %216 : vector<2x128xf32>
    %238 = vector.extract_strided_slice %236 {offsets = [0, 0], sizes = [2, 32], strides = [1, 1]} : vector<2x128xf32> to vector<2x32xf32>
    %239 = vector.extract_strided_slice %236 {offsets = [0, 32], sizes = [2, 32], strides = [1, 1]} : vector<2x128xf32> to vector<2x32xf32>
    %240 = vector.extract_strided_slice %237 {offsets = [0, 64], sizes = [2, 32], strides = [1, 1]} : vector<2x128xf32> to vector<2x32xf32>
    %241 = vector.extract_strided_slice %236 {offsets = [0, 96], sizes = [2, 32], strides = [1, 1]} : vector<2x128xf32> to vector<2x32xf32>
    %242 = arith.mulf %239, %200 : vector<2x32xf32>
    %243 = arith.mulf %238, %240 : vector<2x32xf32>
    %244 = arith.addf %242, %243 : vector<2x32xf32>
    %245 = math.tanh %244 : vector<2x32xf32>
    %246 = arith.mulf %241, %245 : vector<2x32xf32>
    %c4 = arith.constant 4 : index
    %c0_50 = arith.constant 0 : index
    %c0_51 = arith.constant 0 : index
    %247 = vector.load %arg7[%c4, %c0_50, %c0_51] : memref<8x2x32xf32, #tpu.memory_space<vmem>>, vector<1x2x32xf32>
    %248 = vector.shape_cast %247 : vector<1x2x32xf32> to vector<2x32xf32>
    %249 = vector.shape_cast %246 : vector<2x32xf32> to vector<1x2x32xf32>
    tpu.vector_store %arg7[%c4, %c0_50, %c0_51], %249 {strides = array<i32>} : memref<8x2x32xf32, #tpu.memory_space<vmem>>, vector<1x2x32xf32>,
    %250 = vector.extract_strided_slice %5 {offsets = [12, 0], sizes = [2, 128], strides = [1, 1]} : vector<16x128xf32> to vector<2x128xf32>
    %251 = arith.truncf %231 : vector<2x32xf32> to vector<2x32xbf16>
    %cst_52 = arith.constant dense<0.000000e+00> : vector<2x128xf32>
    %252 = tpu.matmul %251, %6, %cst_52 {dimension_numbers = #tpu.dot_dimension_numbers<[1], [0], [0], [1], [0, 0, 1, 1], [], []>} : vector<2x32xbf16>, vector<32x128xbf16>, vector<2x128xf32> -> vector<2x128xf32>
    %253 = arith.addf %250, %252 : vector<2x128xf32>
    %254 = arith.truncf %231 : vector<2x32xf32> to vector<2x32xbf16>
    %cst_53 = arith.constant dense<0.000000e+00> : vector<2x128xf32>
    %255 = tpu.matmul %254, %7, %cst_53 {dimension_numbers = #tpu.dot_dimension_numbers<[1], [0], [0], [1], [0, 0, 1, 1], [], []>} : vector<2x32xbf16>, vector<32x128xbf16>, vector<2x128xf32> -> vector<2x128xf32>
    %256 = arith.truncf %246 : vector<2x32xf32> to vector<2x32xbf16>
    %cst_54 = arith.constant dense<0.000000e+00> : vector<2x128xf32>
    %257 = tpu.matmul %256, %8, %cst_54 {dimension_numbers = #tpu.dot_dimension_numbers<[1], [0], [0], [1], [0, 0, 1, 1], [], []>} : vector<2x32xbf16>, vector<32x128xbf16>, vector<2x128xf32> -> vector<2x128xf32>
    %258 = arith.addf %255, %257 : vector<2x128xf32>
    %259 = vector.broadcast %9 : vector<1x128xf32> to vector<2x128xf32>
    %260 = arith.addf %258, %259 : vector<2x128xf32>
    %261 = arith.negf %253 : vector<2x128xf32>
    %262 = math.exp %261 : vector<2x128xf32>
    %cst_55 = arith.constant 1.000000e+00 : f32
    %263 = vector.broadcast %cst_55 : f32 to vector<2x128xf32>
    %264 = arith.addf %263, %262 : vector<2x128xf32>
    %265 = arith.divf %263, %264 : vector<2x128xf32>
    %266 = math.tanh %253 : vector<2x128xf32>
    %267 = vector.extract_strided_slice %265 {offsets = [0, 0], sizes = [2, 32], strides = [1, 1]} : vector<2x128xf32> to vector<2x32xf32>
    %268 = vector.extract_strided_slice %265 {offsets = [0, 32], sizes = [2, 32], strides = [1, 1]} : vector<2x128xf32> to vector<2x32xf32>
    %269 = vector.extract_strided_slice %266 {offsets = [0, 64], sizes = [2, 32], strides = [1, 1]} : vector<2x128xf32> to vector<2x32xf32>
    %270 = vector.extract_strided_slice %265 {offsets = [0, 96], sizes = [2, 32], strides = [1, 1]} : vector<2x128xf32> to vector<2x32xf32>
    %271 = arith.mulf %268, %229 : vector<2x32xf32>
    %272 = arith.mulf %267, %269 : vector<2x32xf32>
    %273 = arith.addf %271, %272 : vector<2x32xf32>
    %274 = math.tanh %273 : vector<2x32xf32>
    %275 = arith.mulf %270, %274 : vector<2x32xf32>
    %276 = arith.negf %260 : vector<2x128xf32>
    %277 = math.exp %276 : vector<2x128xf32>
    %cst_56 = arith.constant 1.000000e+00 : f32
    %278 = vector.broadcast %cst_56 : f32 to vector<2x128xf32>
    %279 = arith.addf %278, %277 : vector<2x128xf32>
    %280 = arith.divf %278, %279 : vector<2x128xf32>
    %281 = math.tanh %260 : vector<2x128xf32>
    %282 = vector.extract_strided_slice %280 {offsets = [0, 0], sizes = [2, 32], strides = [1, 1]} : vector<2x128xf32> to vector<2x32xf32>
    %283 = vector.extract_strided_slice %280 {offsets = [0, 32], sizes = [2, 32], strides = [1, 1]} : vector<2x128xf32> to vector<2x32xf32>
    %284 = vector.extract_strided_slice %281 {offsets = [0, 64], sizes = [2, 32], strides = [1, 1]} : vector<2x128xf32> to vector<2x32xf32>
    %285 = vector.extract_strided_slice %280 {offsets = [0, 96], sizes = [2, 32], strides = [1, 1]} : vector<2x128xf32> to vector<2x32xf32>
    %286 = arith.mulf %283, %244 : vector<2x32xf32>
    %287 = arith.mulf %282, %284 : vector<2x32xf32>
    %288 = arith.addf %286, %287 : vector<2x32xf32>
    %289 = math.tanh %288 : vector<2x32xf32>
    %290 = arith.mulf %285, %289 : vector<2x32xf32>
    %c5 = arith.constant 5 : index
    %c0_57 = arith.constant 0 : index
    %c0_58 = arith.constant 0 : index
    %291 = vector.load %arg7[%c5, %c0_57, %c0_58] : memref<8x2x32xf32, #tpu.memory_space<vmem>>, vector<1x2x32xf32>
    %292 = vector.shape_cast %291 : vector<1x2x32xf32> to vector<2x32xf32>
    %293 = vector.shape_cast %290 : vector<2x32xf32> to vector<1x2x32xf32>
    tpu.vector_store %arg7[%c5, %c0_57, %c0_58], %293 {strides = array<i32>} : memref<8x2x32xf32, #tpu.memory_space<vmem>>, vector<1x2x32xf32>,
    %294 = vector.extract_strided_slice %5 {offsets = [14, 0], sizes = [2, 128], strides = [1, 1]} : vector<16x128xf32> to vector<2x128xf32>
    %295 = arith.truncf %275 : vector<2x32xf32> to vector<2x32xbf16>
    %cst_59 = arith.constant dense<0.000000e+00> : vector<2x128xf32>
    %296 = tpu.matmul %295, %6, %cst_59 {dimension_numbers = #tpu.dot_dimension_numbers<[1], [0], [0], [1], [0, 0, 1, 1], [], []>} : vector<2x32xbf16>, vector<32x128xbf16>, vector<2x128xf32> -> vector<2x128xf32>
    %297 = arith.addf %294, %296 : vector<2x128xf32>
    %298 = arith.truncf %275 : vector<2x32xf32> to vector<2x32xbf16>
    %cst_60 = arith.constant dense<0.000000e+00> : vector<2x128xf32>
    %299 = tpu.matmul %298, %7, %cst_60 {dimension_numbers = #tpu.dot_dimension_numbers<[1], [0], [0], [1], [0, 0, 1, 1], [], []>} : vector<2x32xbf16>, vector<32x128xbf16>, vector<2x128xf32> -> vector<2x128xf32>
    %300 = arith.truncf %290 : vector<2x32xf32> to vector<2x32xbf16>
    %cst_61 = arith.constant dense<0.000000e+00> : vector<2x128xf32>
    %301 = tpu.matmul %300, %8, %cst_61 {dimension_numbers = #tpu.dot_dimension_numbers<[1], [0], [0], [1], [0, 0, 1, 1], [], []>} : vector<2x32xbf16>, vector<32x128xbf16>, vector<2x128xf32> -> vector<2x128xf32>
    %302 = arith.addf %299, %301 : vector<2x128xf32>
    %303 = vector.broadcast %9 : vector<1x128xf32> to vector<2x128xf32>
    %304 = arith.addf %302, %303 : vector<2x128xf32>
    %305 = arith.negf %297 : vector<2x128xf32>
    %306 = math.exp %305 : vector<2x128xf32>
    %cst_62 = arith.constant 1.000000e+00 : f32
    %307 = vector.broadcast %cst_62 : f32 to vector<2x128xf32>
    %308 = arith.addf %307, %306 : vector<2x128xf32>
    %309 = arith.divf %307, %308 : vector<2x128xf32>
    %310 = math.tanh %297 : vector<2x128xf32>
    %311 = vector.extract_strided_slice %309 {offsets = [0, 0], sizes = [2, 32], strides = [1, 1]} : vector<2x128xf32> to vector<2x32xf32>
    %312 = vector.extract_strided_slice %309 {offsets = [0, 32], sizes = [2, 32], strides = [1, 1]} : vector<2x128xf32> to vector<2x32xf32>
    %313 = vector.extract_strided_slice %310 {offsets = [0, 64], sizes = [2, 32], strides = [1, 1]} : vector<2x128xf32> to vector<2x32xf32>
    %314 = vector.extract_strided_slice %309 {offsets = [0, 96], sizes = [2, 32], strides = [1, 1]} : vector<2x128xf32> to vector<2x32xf32>
    %315 = arith.mulf %312, %273 : vector<2x32xf32>
    %316 = arith.mulf %311, %313 : vector<2x32xf32>
    %317 = arith.addf %315, %316 : vector<2x32xf32>
    %318 = math.tanh %317 : vector<2x32xf32>
    %319 = arith.mulf %314, %318 : vector<2x32xf32>
    %320 = arith.negf %304 : vector<2x128xf32>
    %321 = math.exp %320 : vector<2x128xf32>
    %cst_63 = arith.constant 1.000000e+00 : f32
    %322 = vector.broadcast %cst_63 : f32 to vector<2x128xf32>
    %323 = arith.addf %322, %321 : vector<2x128xf32>
    %324 = arith.divf %322, %323 : vector<2x128xf32>
    %325 = math.tanh %304 : vector<2x128xf32>
    %326 = vector.extract_strided_slice %324 {offsets = [0, 0], sizes = [2, 32], strides = [1, 1]} : vector<2x128xf32> to vector<2x32xf32>
    %327 = vector.extract_strided_slice %324 {offsets = [0, 32], sizes = [2, 32], strides = [1, 1]} : vector<2x128xf32> to vector<2x32xf32>
    %328 = vector.extract_strided_slice %325 {offsets = [0, 64], sizes = [2, 32], strides = [1, 1]} : vector<2x128xf32> to vector<2x32xf32>
    %329 = vector.extract_strided_slice %324 {offsets = [0, 96], sizes = [2, 32], strides = [1, 1]} : vector<2x128xf32> to vector<2x32xf32>
    %330 = arith.mulf %327, %288 : vector<2x32xf32>
    %331 = arith.mulf %326, %328 : vector<2x32xf32>
    %332 = arith.addf %330, %331 : vector<2x32xf32>
    %333 = math.tanh %332 : vector<2x32xf32>
    %334 = arith.mulf %329, %333 : vector<2x32xf32>
    %c6 = arith.constant 6 : index
    %c0_64 = arith.constant 0 : index
    %c0_65 = arith.constant 0 : index
    %335 = vector.load %arg7[%c6, %c0_64, %c0_65] : memref<8x2x32xf32, #tpu.memory_space<vmem>>, vector<1x2x32xf32>
    %336 = vector.shape_cast %335 : vector<1x2x32xf32> to vector<2x32xf32>
    %337 = vector.shape_cast %334 : vector<2x32xf32> to vector<1x2x32xf32>
    tpu.vector_store %arg7[%c6, %c0_64, %c0_65], %337 {strides = array<i32>} : memref<8x2x32xf32, #tpu.memory_space<vmem>>, vector<1x2x32xf32>,
    %338 = arith.truncf %319 : vector<2x32xf32> to vector<2x32xbf16>
    %cst_66 = arith.constant dense<0.000000e+00> : vector<2x128xf32>
    %339 = tpu.matmul %338, %7, %cst_66 {dimension_numbers = #tpu.dot_dimension_numbers<[1], [0], [0], [1], [0, 0, 1, 1], [], []>} : vector<2x32xbf16>, vector<32x128xbf16>, vector<2x128xf32> -> vector<2x128xf32>
    %340 = arith.truncf %334 : vector<2x32xf32> to vector<2x32xbf16>
    %cst_67 = arith.constant dense<0.000000e+00> : vector<2x128xf32>
    %341 = tpu.matmul %340, %8, %cst_67 {dimension_numbers = #tpu.dot_dimension_numbers<[1], [0], [0], [1], [0, 0, 1, 1], [], []>} : vector<2x32xbf16>, vector<32x128xbf16>, vector<2x128xf32> -> vector<2x128xf32>
    %342 = arith.addf %339, %341 : vector<2x128xf32>
    %343 = vector.broadcast %9 : vector<1x128xf32> to vector<2x128xf32>
    %344 = arith.addf %342, %343 : vector<2x128xf32>
    %345 = arith.negf %344 : vector<2x128xf32>
    %346 = math.exp %345 : vector<2x128xf32>
    %cst_68 = arith.constant 1.000000e+00 : f32
    %347 = vector.broadcast %cst_68 : f32 to vector<2x128xf32>
    %348 = arith.addf %347, %346 : vector<2x128xf32>
    %349 = arith.divf %347, %348 : vector<2x128xf32>
    %350 = math.tanh %344 : vector<2x128xf32>
    %351 = vector.extract_strided_slice %349 {offsets = [0, 0], sizes = [2, 32], strides = [1, 1]} : vector<2x128xf32> to vector<2x32xf32>
    %352 = vector.extract_strided_slice %349 {offsets = [0, 32], sizes = [2, 32], strides = [1, 1]} : vector<2x128xf32> to vector<2x32xf32>
    %353 = vector.extract_strided_slice %350 {offsets = [0, 64], sizes = [2, 32], strides = [1, 1]} : vector<2x128xf32> to vector<2x32xf32>
    %354 = vector.extract_strided_slice %349 {offsets = [0, 96], sizes = [2, 32], strides = [1, 1]} : vector<2x128xf32> to vector<2x32xf32>
    %355 = arith.mulf %352, %332 : vector<2x32xf32>
    %356 = arith.mulf %351, %353 : vector<2x32xf32>
    %357 = arith.addf %355, %356 : vector<2x32xf32>
    %358 = math.tanh %357 : vector<2x32xf32>
    %359 = arith.mulf %354, %358 : vector<2x32xf32>
    %c7 = arith.constant 7 : index
    %c0_69 = arith.constant 0 : index
    %c0_70 = arith.constant 0 : index
    %360 = vector.load %arg7[%c7, %c0_69, %c0_70] : memref<8x2x32xf32, #tpu.memory_space<vmem>>, vector<1x2x32xf32>
    %361 = vector.shape_cast %360 : vector<1x2x32xf32> to vector<2x32xf32>
    %362 = vector.shape_cast %359 : vector<2x32xf32> to vector<1x2x32xf32>
    tpu.vector_store %arg7[%c7, %c0_69, %c0_70], %362 {strides = array<i32>} : memref<8x2x32xf32, #tpu.memory_space<vmem>>, vector<1x2x32xf32>,
    %c0_71 = arith.constant 0 : index
    %c0_72 = arith.constant 0 : index
    %c0_73 = arith.constant 0 : index
    %363 = vector.load %arg8[%c0_71, %c0_72, %c0_73] : memref<2x2x32xf32, #tpu.memory_space<vmem>>, vector<1x2x32xf32>
    %364 = vector.shape_cast %363 : vector<1x2x32xf32> to vector<2x32xf32>
    %365 = vector.shape_cast %319 : vector<2x32xf32> to vector<1x2x32xf32>
    tpu.vector_store %arg8[%c0_71, %c0_72, %c0_73], %365 {strides = array<i32>} : memref<2x2x32xf32, #tpu.memory_space<vmem>>, vector<1x2x32xf32>,
    %c1_74 = arith.constant 1 : index
    %c0_75 = arith.constant 0 : index
    %c0_76 = arith.constant 0 : index
    %366 = vector.load %arg8[%c1_74, %c0_75, %c0_76] : memref<2x2x32xf32, #tpu.memory_space<vmem>>, vector<1x2x32xf32>
    %367 = vector.shape_cast %366 : vector<1x2x32xf32> to vector<2x32xf32>
    %368 = vector.shape_cast %359 : vector<2x32xf32> to vector<1x2x32xf32>
    tpu.vector_store %arg8[%c1_74, %c0_75, %c0_76], %368 {strides = array<i32>} : memref<2x2x32xf32, #tpu.memory_space<vmem>>, vector<1x2x32xf32>,
    return
  }
}

</mosaic_0001>

<bundles_post_ra>
// kernel: lstm_forward.1
= control target key start
LH: loop header
LB: loop body
LE: loop exit
PB: predicated region body
PF: predicated region fallthrough
CT: control target
= control target key end

     0   :  { %14 = vsyncpa [#allocation3], 0  ;;  %s2786_s0 = inlined_call_operand.vmem [shape: bf16[16,16], index: 0, kind: input, shape index: {}]   ;;  %s2787_s1 = inlined_call_operand.hbm [shape: bf16[16,128], index: 1, kind: input, shape index: {}]   ;;  %s2788_s2 = inlined_call_operand.vmem [shape: bf16[32,128], index: 2, kind: input, shape index: {}]   ;;  %s2789_s3 = inlined_call_operand.vmem [shape: f32[1,128], index: 3, kind: input, shape index: {}]   ;;  %s2790_s4 = inlined_call_operand.vmem [shape: bf16[32,128], index: 4, kind: input, shape index: {}]   ;;  %s2791_s5 = inlined_call_operand.vmem [shape: bf16[32,128], index: 5, kind: input, shape index: {}]   ;;  %s2792_s6 = inlined_call_operand.vmem [shape: f32[1,128], index: 6, kind: input, shape index: {}]   ;;  %s2793_s7 = inlined_call_operand.vmem [shape: f32[8,2,32], index: 7, kind: output, shape index: {0}]   ;;  %s2794_s8 = inlined_call_operand.hbm [shape: f32[2,2,32], index: 8, kind: output, shape index: {1}]  }
   0x1   :  { %15 = vsyncpa [#allocation4], 0  ;;  %s2281_s27 = smov [#allocation2]   ;;  %s2233_s9 = scalar_lea.hbm %s2787_s1, 128 }
   0x2   :  { %s23_s28 = sshll.u32 %s2281_s27, 4  ;;  %p2234_p0 = scmp.ne.s32.totalorder %s2787_s1, %s2233_s9  ;;  %s24_s28 = int_to_ptr.vmem [resolvable:$true] %s23_s28 }
   0x3   :  { %p2237_p1 = scmp.lt.u32.totalorder %s2233_s9, %s2787_s1 }
   0x5   :  { %p2239_p2 = pnand %p2237_p1, %p2234_p0 }
   0x7   :  { %2242 = shalt.err (!%p2239_p2)
}
   0x8   :  { %s2243_s14 = scalar_lea.vmem %s24_s28, 128  ;;  %p2248_p4 = scmp.lt.s32.totalorder %s24_s28, %s24_s28 }
   0x9   :  { %p2244_p3 = scmp.ne.s32.totalorder %s24_s28, %s2243_s14  ;;  %p2249_p5 = scmp.lt.s32.totalorder %s2243_s14, %s2243_s14 }
   0xb   :  { %p2250_p6 = por %p2249_p5, %p2248_p4 }
   0xd   :  { %p2251_p7 = pnand %p2250_p6, %p2244_p3 }
   0xf   :  { %2254 = shalt.err (!%p2251_p7)
}
  0x10   :  { %s2282_s15 = smov 64   ;;  %s2283_s16 = smov 4  }
  0x11   :  { %29 = dma.hbm_to_vmem [thread:$0]  %s2787_s1, 128, %s24_s28, [#allocation3], %s2282_s15, %s2282_s15, %s2283_s16  }
  0x12   :  { %2277 = dma.done.wait [#allocation3], 128  }
  0x13   :  { %2278 = vsyncadd [#allocation3], 4294967168  ;;  %v2284_v0 = vmov 0.0   ;;  %vm2285_vm0 = vmmov 0   ;;  %v2094_v1 = vld [vmem:[#allocation2] sm:$0xff]   ;;  %vm66_vm1 = vcmask 130048  }
  0x14   :  { %1887 = vmatprep.subr.bf16.mxu0 %v2284_v0  ;;  %1893 = vmatprep.subr.bf16.mxu1 %v2284_v0  ;;  %v2358_v2 = vld [vmem:[%s2788_s2] sm:$0xff]   ;;  %v2367_v4 = vld [vmem:[%s2788_s2 + $0x8] sm:$0xff]   ;;  %v2286_v5 = vmov 0   ;;  %vm136_vm2 = vcmask 261120   ;;  %vm422_vm3 = vcmask 254976   ;;  %vm1732_vm4 = vcmask 261126  }
  0x15   :  { %1889 = vmatprep.mubr.msk.bf16.mxu0 %vm2285_vm0, %v2284_v0  ;;  %1897 = vmatprep.mubr.msk.bf16.mxu1 %vm2285_vm0, %v2284_v0  ;;  %v2096_v3 = vld [vmem:[%s2786_s0] sm:$0xff]   ;;  %v2405_v30 = vld [vmem:[%s2791_s5 + $0x8] sm:$0xff]   ;;  %s2288_s24 = smov [#allocation5]  }
  0x16   :  { %1888 = vmatpush3.bf16.msra.mxu0 %v2094_v1  ;;  %1894 = vmatpush3.bf16.msra.mxu1 %v2358_v2  ;;  %v1757_v6 = vld [vmem:[%s2789_s3] ss:$0 sm:$0xff]  ;;  %s2287_s3 = smov 32   ;;  %v2426_v36 = vld [vmem:[%s2790_s4 + $0x8] sm:$0xff]   ;;  %s1743_s25 = sshll.u32 %s2288_s24, 4  ;;  %s1744_s25 = int_to_ptr.vmem [resolvable:$true] %s1743_s25 }
  0x17   :  { %1901 = vmatprep.subr.bf16.mxu0 %v2284_v0  ;;  %1895 = vmatprep.subr.bf16.mxu1 %v2284_v0  ;;  %v2398_v29 = vld [vmem:[%s2791_s5] sm:$0xff]   ;;  %s2255_s28 = scalar_lea.vmem %s1744_s25, 64  ;;  %p2260_p9 = scmp.lt.s32.totalorder %s1744_s25, %s1744_s25 }
  0x18   :  { %v2419_v34 = vld [vmem:[%s2790_s4] sm:$0xff]   ;;  %p2256_p8 = scmp.ne.s32.totalorder %s1744_s25, %s2255_s28  ;;  %p2261_p10 = scmp.lt.s32.totalorder %s2255_s28, %s2255_s28 }
  0x19   :  { %1890 = vmatmul.mubr.msk.bf16.vlgmr.msra.gmra.mrb[0].mxu0 %vm66_vm1, %v2096_v3  ;;  %v2444_v47 = vld [vmem:[%s2792_s6] ss:$0 sm:$0xff] }
  0x1a   :  { %1902 = vmatpush3.bf16.msra.mxu0 %v2358_v2  ;;  %1905 = vmatprep.mubr.msk.bf16.mxu0 %vm2285_vm0, %v2284_v0  ;;  %p2262_p11 = por %p2261_p10, %p2260_p9 }
  0x1b   :  { %1896 = vmatpush3.bf16.msra.mxu1 %v2367_v4  ;;  %1903 = vmatprep.subr.bf16.mxu0 %v2284_v0 }
  0x1c   :  { %1909 = vmatprep.subr.bf16.mxu1 %v2284_v0  ;;  %p2263_p12 = pnand %p2262_p11, %p2256_p8 }
  0x1e   :  { %1898 = vmatmul.mubr.bf16.vlgmr.msra.gmra.mrb[0].mxu1 %v2286_v5  ;;  %1904 = vmatpush3.bf16.msra.mxu0 %v2367_v4 }
  0x1f   :  { %1917 = vmatprep.subr.bf16.mxu0 %v2284_v0  ;;  %1913 = vmatprep.mubr.msk.bf16.mxu1 %vm2285_vm0, %v2284_v0 }
  0x20   :  { %1910 = vmatpush3.bf16.msra.mxu1 %v2398_v29 }
  0x21   :  { %1911 = vmatprep.subr.bf16.mxu1 %v2284_v0 }
  0x24   :  { %1912 = vmatpush3.bf16.msra.mxu1 %v2405_v30 }
  0x25   :  { %1925 = vmatprep.subr.bf16.mxu1 %v2284_v0 }
  0x27   :  { %1914 = vmatmul.mubr.bf16.vlgmr.msra.gmra.mrb[4].mxu1 %v2286_v5 }
  0x28   :  { %1926 = vmatpush3.bf16.msra.mxu1 %v2358_v2  ;;  %1929 = vmatprep.mubr.msk.bf16.mxu1 %vm2285_vm0, %v2284_v0 }
  0x29   :  { %1927 = vmatprep.subr.bf16.mxu1 %v2284_v0 }
  0x2c   :  { %1928 = vmatpush3.bf16.msra.mxu1 %v2367_v4 }
  0x2d   :  { %1941 = vmatprep.subr.bf16.mxu1 %v2284_v0 }
  0xec   :  { %v104_v7 = vpop.f32.mrb[0].mxu0 }
  0xed   :  { %v1891_v8 = vpop.f32.mrb[1].mxu0  ;;  %v2384_v9 = vadd.f32 %v1757_v6, %v104_v7 }
  0xee   :  { %v107_v10 = vpop.f32.mrb[2].mxu0 }
  0xef   :  { %v2386_v11 = vadd.f32 %v1757_v6, %v107_v10  ;;  %v1892_v12 = vpop.f32.mrb[3].mxu0 }
  0xf1   :  { %v174_v13 = vpop.f32.mrb[0].mxu1 }
  0xf2   :  { %v180_v14 = vadd.f32 %v174_v13, %v2384_v9  ;;  %v1899_v15 = vpop.f32.mrb[1].mxu1 }
  0xf3   :  { %v177_v16 = vpop.f32.mrb[2].mxu1 }
  0xf4   :  { %v1900_v17 = vpop.f32.mrb[3].mxu1  ;;  %2102 = vtanh.f32 %v180_v14  ;;  %v1763_v19 = vmul.f32 -1.442695, %v180_v14 }
  0xf6   :  { %2104 = vpow2.f32 %v1763_v19 }
  0xfa   :  { %v302_v37 = vpop.f32.mrb[4].mxu1 }
  0xfb   :  { %v1915_v38 = vpop.f32.mrb[5].mxu1 }
  0xfc   :  { %v305_v39 = vpop.f32.mrb[6].mxu1 }
  0xfd   :  { %v1916_v40 = vpop.f32.mrb[7].mxu1 }
  0xfe   :  { %v2103_v18 = vpop.eup %2102 }
  0xff   :  { %190 = vrot.lane.b32.xlu0 %v2103_v18, %s2282_s15 }
 0x100   :  { %v2105_v20 = vpop.eup %2104 }
 0x101   :  { %v184_v21 = vadd.f32 1.0, %v2105_v20 }
 0x103   :  { %2106 = vrcp.f32 %v184_v21 }
 0x10d   :  { %v2107_v22 = vpop.eup %2106 }
 0x10e   :  { %v188_v25 = vmul.f32 0.0, %v2107_v22 }
 0x171   :  { %v191_v23 = vpop.permute.xlu0 %190 }
 0x172   :  { %v193_v24 = vmul.f32 %v2107_v22, %v191_v23 }
 0x174   :  { %195 = vrot.lane.b32.xlu0 %v193_v24, %s2287_s3 }
 0x1e6   :  { %v196_v26 = vpop.permute.xlu0 %195 }
 0x1e7   :  { %v2391_v27 = vadd.f32 %v196_v26, %v188_v25 }
 0x1e9   :  { %2108 = vtanh.f32 %v2391_v27  ;;  %v375_v7 = vrot.slane %v2391_v27, 6 }
 0x1f3   :  { %v2109_v28 = vpop.eup %2108 }
 0x1f4   :  { %201 = vrot.lane.b32.xlu1 %v2109_v28, %s2282_s15 }
 0x266   :  { %v202_v31 = vpop.permute.xlu1 %201 }
 0x267   :  { %v204_v32 = vmul.f32 %v2107_v22, %v202_v31 }
 0x269   :  { %v205_v33 = vpack.c.bf16 %v204_v32, %v204_v32 }
 0x26b   :  { %207 = vrot.lane.b32.xlu1 %v205_v33, %s2287_s3 }
 0x2dd   :  { %v208_v35 = vpop.permute.xlu1 %207 }
 0x2de   :  { %1906 = vmatmul.mubr.msk.bf16.vlgmr.msra.gmra.mrb[4].mxu0 %vm136_vm2, %v208_v35 }
 0x2df   :  { %1918 = vmatpush3.bf16.msra.mxu0 %v2419_v34  ;;  %1921 = vmatprep.mubr.msk.bf16.mxu0 %vm2285_vm0, %v2284_v0 }
 0x2e0   :  { %1919 = vmatprep.subr.bf16.mxu0 %v2284_v0 }
 0x2e3   :  { %1920 = vmatpush3.bf16.msra.mxu0 %v2426_v36 }
 0x2e4   :  { %1933 = vmatprep.subr.bf16.mxu0 %v2284_v0 }
 0x2e6   :  { %1922 = vmatmul.mubr.msk.bf16.vlgmr.msra.gmra.mrb[8].mxu0 %vm136_vm2, %v208_v35 }
 0x2e7   :  { %1934 = vmatpush3.bf16.msra.mxu0 %v2398_v29  ;;  %1937 = vmatprep.mubr.msk.bf16.mxu0 %vm2285_vm0, %v2284_v0 }
 0x2e8   :  { %1935 = vmatprep.subr.bf16.mxu0 %v2284_v0 }
 0x2eb   :  { %1936 = vmatpush3.bf16.msra.mxu0 %v2405_v30 }
 0x2ec   :  { %1949 = vmatprep.subr.bf16.mxu0 %v2284_v0 }
 0x3b1   :  { %v246_v41 = vpop.f32.mrb[4].mxu0 }
 0x3b2   :  { %v253_v42 = vrot.slane %v246_v41, 6  ;;  %v1907_v43 = vpop.f32.mrb[5].mxu0 }
 0x3b3   :  { %v249_v44 = vpop.f32.mrb[6].mxu0 }
 0x3b4   :  { %v255_v45 = vadd.f32 %v253_v42, %v2384_v9  ;;  %v1908_v46 = vpop.f32.mrb[7].mxu0 }
 0x3b6   :  { %2110 = vtanh.f32 %v255_v45  ;;  %v1771_v56 = vmul.f32 -1.442695, %v255_v45 }
 0x3b9   :  { %v354_v48 = vpop.f32.mrb[8].mxu0 }
 0x3ba   :  { %v355_v49 = vadd.f32 %v354_v48, %v302_v37  ;;  %v1923_v50 = vpop.f32.mrb[9].mxu0 }
 0x3bb   :  { %v357_v51 = vpop.f32.mrb[10].mxu0 }
 0x3bc   :  { %v366_v52 = vadd.f32 %v2444_v47, %v355_v49  ;;  %v1924_v53 = vpop.f32.mrb[11].mxu0 }
 0x3be   :  { %2112 = vtanh.f32 %v366_v52  ;;  %v1772_v57 = vmul.f32 -1.442695, %v366_v52 }
 0x3bf   :  { %2114 = vpow2.f32 %v1771_v56 }
 0x3c0   :  { %v2111_v54 = vpop.eup %2110  ;;  %2116 = vpow2.f32 %v1772_v57 }
 0x3c1   :  { %379 = vrot.lane.b32.xlu0 %v2111_v54, %s2282_s15 }
 0x3c8   :  { %v2113_v55 = vpop.eup %2112 }
 0x3c9   :  { %403 = vrot.lane.b32.xlu1 %v2113_v55, %s2282_s15  ;;  %v2115_v58 = vpop.eup %2114 }
 0x3ca   :  { %v370_v59 = vadd.f32 1.0, %v2115_v58  ;;  %v2117_v60 = vpop.eup %2116 }
 0x3cb   :  { %v397_v61 = vadd.f32 1.0, %v2117_v60 }
 0x3cc   :  { %2118 = vrcp.f32 %v370_v59 }
 0x3cd   :  { %2120 = vrcp.f32 %v397_v61 }
 0x3d6   :  { %v2119_v62 = vpop.eup %2118 }
 0x3d7   :  { %v2121_v3 = vpop.eup %2120  ;;  %v377_v8 = vmul.f32 %v2119_v62, %v375_v7 }
 0x3d8   :  { %v401_v13 = vmul.f32 0.0, %v2121_v3 }
 0x433   :  { %v380_v63 = vpop.permute.xlu0 %379 }
 0x434   :  { %v382_v1 = vmul.f32 %v2119_v62, %v380_v63 }
 0x436   :  { %384 = vrot.lane.b32.xlu0 %v382_v1, %s2287_s3 }
 0x43b   :  { %v404_v5 = vpop.permute.xlu1 %403 }
 0x43c   :  { %v406_v6 = vmul.f32 %v2121_v3, %v404_v5 }
 0x43e   :  { %408 = vrot.lane.b32.xlu1 %v406_v6, %s2287_s3 }
 0x4a8   :  { %v385_v10 = vpop.permute.xlu0 %384 }
 0x4a9   :  { %v2452_v12 = vadd.f32 %v385_v10, %v377_v8 }
 0x4ab   :  { %2122 = vtanh.f32 %v2452_v12 }
 0x4b0   :  { %v409_v14 = vpop.permute.xlu1 %408 }
 0x4b1   :  { %v2455_v15 = vadd.f32 %v409_v14, %v401_v13 }
 0x4b3   :  { %2124 = vtanh.f32 %v2455_v15 }
 0x4b5   :  { %v2123_v16 = vpop.eup %2122 }
 0x4b6   :  { %390 = vrot.lane.b32.xlu0 %v2123_v16, %s2282_s15 }
 0x4bd   :  { %v2125_v17 = vpop.eup %2124 }
 0x4be   :  { %414 = vrot.lane.b32.xlu1 %v2125_v17, %s2282_s15 }
 0x528   :  { %v391_v18 = vpop.permute.xlu0 %390 }
 0x529   :  { %v393_v19 = vmul.f32 %v2119_v62, %v391_v18  ;;  %v572_v62 = vrot.slane %v2452_v12, 6 }
 0x52b   :  { %v424_v20 = vpack.c.bf16 %v393_v19, %v393_v19 }
 0x52d   :  { %v426_v21 = vrot.slane %v424_v20, 1 }
 0x52f   :  { %427 = vrot.lane.b32.xlu0 %v426_v21, %s2287_s3 }
 0x530   :  { %v415_v22 = vpop.permute.xlu1 %414 }
 0x531   :  { %v2461_v23 = vmul.f32 %v2121_v3, %v415_v22 }
 0x533   :  { %v476_v24 = vpack.c.bf16 %v2461_v23, %v2461_v23 }
 0x535   :  { %478 = vrot.lane.b32.xlu1 %v476_v24, %s2287_s3 }
 0x5a1   :  { %v428_v25 = vpop.permute.xlu0 %427 }
 0x5a2   :  { %1930 = vmatmul.mubr.msk.bf16.vlgmr.msra.gmra.mrb[8].mxu1 %vm136_vm2, %v428_v25 }
 0x5a3   :  { %1942 = vmatpush3.bf16.msra.mxu1 %v2419_v34  ;;  %1945 = vmatprep.mubr.msk.bf16.mxu1 %vm2285_vm0, %v2284_v0 }
 0x5a4   :  { %1943 = vmatprep.subr.bf16.mxu1 %v2284_v0 }
 0x5a7   :  { %1944 = vmatpush3.bf16.msra.mxu1 %v2426_v36  ;;  %v479_v26 = vpop.permute.xlu1 %478 }
 0x5a8   :  { %1938 = vmatmul.mubr.msk.bf16.vlgmr.msra.gmra.mrb[12].mxu0 %vm136_vm2, %v479_v26  ;;  %1957 = vmatprep.subr.bf16.mxu1 %v2284_v0 }
 0x5a9   :  { %1950 = vmatpush3.bf16.msra.mxu0 %v2358_v2  ;;  %1953 = vmatprep.mubr.msk.bf16.mxu0 %vm2285_vm0, %v2284_v0 }
 0x5aa   :  { %1946 = vmatmul.mubr.msk.bf16.vlgmr.msra.gmra.mrb[12].mxu1 %vm136_vm2, %v428_v25  ;;  %1951 = vmatprep.subr.bf16.mxu0 %v2284_v0 }
 0x5ab   :  { %1958 = vmatpush3.bf16.msra.mxu1 %v2398_v29  ;;  %1961 = vmatprep.mubr.msk.bf16.mxu1 %vm2285_vm0, %v2284_v0 }
 0x5ac   :  { %1959 = vmatprep.subr.bf16.mxu1 %v2284_v0 }
 0x5ad   :  { %1952 = vmatpush3.bf16.msra.mxu0 %v2367_v4 }
 0x5ae   :  { %1965 = vmatprep.subr.bf16.mxu0 %v2284_v0 }
 0x5af   :  { %1960 = vmatpush3.bf16.msra.mxu1 %v2405_v30 }
 0x5b0   :  { %1973 = vmatprep.subr.bf16.mxu1 %v2284_v0 }
 0x675   :  { %v466_v27 = vpop.f32.mrb[8].mxu1 }
 0x676   :  { %v473_v28 = vrot.slane %v466_v27, 4  ;;  %v1931_v31 = vpop.f32.mrb[9].mxu1 }
 0x677   :  { %v469_v32 = vpop.f32.mrb[10].mxu1 }
 0x678   :  { %v475_v33 = vadd.f32 %v473_v28, %v2384_v9  ;;  %v1932_v35 = vpop.f32.mrb[11].mxu1 }
 0x67a   :  { %2126 = vtanh.f32 %v475_v33  ;;  %v1776_v50 = vmul.f32 -1.442695, %v475_v33 }
 0x67b   :  { %v517_v37 = vpop.f32.mrb[12].mxu0 }
 0x67c   :  { %v1939_v38 = vpop.f32.mrb[13].mxu0 }
 0x67d   :  { %v520_v39 = vpop.f32.mrb[14].mxu0  ;;  %v557_v40 = vpop.f32.mrb[12].mxu1 }
 0x67e   :  { %v558_v41 = vadd.f32 %v557_v40, %v517_v37  ;;  %v1940_v42 = vpop.f32.mrb[15].mxu0  ;;  %v1947_v43 = vpop.f32.mrb[13].mxu1 }
 0x67f   :  { %v560_v44 = vpop.f32.mrb[14].mxu1 }
 0x680   :  { %v563_v45 = vadd.f32 %v2444_v47, %v558_v41  ;;  %v1948_v46 = vpop.f32.mrb[15].mxu1 }
 0x682   :  { %2128 = vtanh.f32 %v563_v45  ;;  %v1777_v51 = vmul.f32 -1.442695, %v563_v45 }
 0x683   :  { %2130 = vpow2.f32 %v1776_v50 }
 0x684   :  { %v2127_v48 = vpop.eup %2126  ;;  %2132 = vpow2.f32 %v1777_v51 }
 0x685   :  { %576 = vrot.lane.b32.xlu0 %v2127_v48, %s2282_s15 }
 0x68c   :  { %v2129_v49 = vpop.eup %2128 }
 0x68d   :  { %600 = vrot.lane.b32.xlu1 %v2129_v49, %s2282_s15  ;;  %v2131_v52 = vpop.eup %2130 }
 0x68e   :  { %v567_v53 = vadd.f32 1.0, %v2131_v52  ;;  %v2133_v54 = vpop.eup %2132 }
 0x68f   :  { %v594_v55 = vadd.f32 1.0, %v2133_v54 }
 0x690   :  { %2134 = vrcp.f32 %v567_v53 }
 0x691   :  { %2136 = vrcp.f32 %v594_v55 }
 0x69a   :  { %v2135_v56 = vpop.eup %2134 }
 0x69b   :  { %v2137_v59 = vpop.eup %2136  ;;  %v574_v63 = vmul.f32 %v2135_v56, %v572_v62 }
 0x69c   :  { %v598_v5 = vmul.f32 %v2137_v59, %v2455_v15 }
 0x6f7   :  { %v577_v57 = vpop.permute.xlu0 %576 }
 0x6f8   :  { %v579_v58 = vmul.f32 %v2135_v56, %v577_v57 }
 0x6fa   :  { %581 = vrot.lane.b32.xlu0 %v579_v58, %s2287_s3 }
 0x6ff   :  { %v601_v60 = vpop.permute.xlu1 %600 }
 0x700   :  { %v603_v61 = vmul.f32 %v2137_v59, %v601_v60 }
 0x702   :  { %605 = vrot.lane.b32.xlu1 %v603_v61, %s2287_s3 }
 0x76c   :  { %v582_v1 = vpop.permute.xlu0 %581 }
 0x76d   :  { %v2494_v3 = vadd.f32 %v582_v1, %v574_v63 }
 0x76f   :  { %2138 = vtanh.f32 %v2494_v3 }
 0x774   :  { %v606_v6 = vpop.permute.xlu1 %605 }
 0x775   :  { %v2498_v7 = vadd.f32 %v606_v6, %v598_v5 }
 0x777   :  { %2140 = vtanh.f32 %v2498_v7 }
 0x779   :  { %v2139_v8 = vpop.eup %2138 }
 0x77a   :  { %587 = vrot.lane.b32.xlu0 %v2139_v8, %s2282_s15 }
 0x781   :  { %v2141_v10 = vpop.eup %2140 }
 0x782   :  { %611 = vrot.lane.b32.xlu1 %v2141_v10, %s2282_s15 }
 0x7ec   :  { %v588_v12 = vpop.permute.xlu0 %587 }
 0x7ed   :  { %v590_v13 = vmul.f32 %v2135_v56, %v588_v12  ;;  %v769_v56 = vrot.slane %v2494_v3, 6 }
 0x7ef   :  { %v621_v14 = vpack.c.bf16 %v590_v13, %v590_v13 }
 0x7f1   :  { %v623_v16 = vrot.slane %v621_v14, 2 }
 0x7f3   :  { %624 = vrot.lane.b32.xlu0 %v623_v16, %s2287_s3 }
 0x7f4   :  { %v612_v17 = vpop.permute.xlu1 %611 }
 0x7f5   :  { %v2504_v18 = vmul.f32 %v2137_v59, %v612_v17 }
 0x7f7   :  { %v673_v15 = vpack.c.bf16 %v2504_v18, %v2504_v18 }
 0x7f9   :  { %675 = vrot.lane.b32.xlu1 %v673_v15, %s2287_s3 }
 0x865   :  { %v625_v19 = vpop.permute.xlu0 %624 }
 0x866   :  { %1954 = vmatmul.mubr.msk.bf16.vlgmr.msra.gmra.mrb[16].mxu0 %vm136_vm2, %v625_v19 }
 0x867   :  { %1966 = vmatpush3.bf16.msra.mxu0 %v2419_v34  ;;  %1969 = vmatprep.mubr.msk.bf16.mxu0 %vm2285_vm0, %v2284_v0 }
 0x868   :  { %1967 = vmatprep.subr.bf16.mxu0 %v2284_v0 }
 0x86b   :  { %1968 = vmatpush3.bf16.msra.mxu0 %v2426_v36  ;;  %v676_v20 = vpop.permute.xlu1 %675 }
 0x86c   :  { %1962 = vmatmul.mubr.msk.bf16.vlgmr.msra.gmra.mrb[16].mxu1 %vm136_vm2, %v676_v20  ;;  %1981 = vmatprep.subr.bf16.mxu0 %v2284_v0 }
 0x86d   :  { %1974 = vmatpush3.bf16.msra.mxu1 %v2358_v2  ;;  %1977 = vmatprep.mubr.msk.bf16.mxu1 %vm2285_vm0, %v2284_v0 }
 0x86e   :  { %1970 = vmatmul.mubr.msk.bf16.vlgmr.msra.gmra.mrb[20].mxu0 %vm136_vm2, %v625_v19  ;;  %1975 = vmatprep.subr.bf16.mxu1 %v2284_v0 }
 0x86f   :  { %1982 = vmatpush3.bf16.msra.mxu0 %v2398_v29  ;;  %1985 = vmatprep.mubr.msk.bf16.mxu0 %vm2285_vm0, %v2284_v0 }
 0x870   :  { %1983 = vmatprep.subr.bf16.mxu0 %v2284_v0 }
 0x871   :  { %1976 = vmatpush3.bf16.msra.mxu1 %v2367_v4 }
 0x872   :  { %1989 = vmatprep.subr.bf16.mxu1 %v2284_v0 }
 0x873   :  { %1984 = vmatpush3.bf16.msra.mxu0 %v2405_v30 }
 0x874   :  { %1997 = vmatprep.subr.bf16.mxu0 %v2284_v0 }
 0x939   :  { %v663_v21 = vpop.f32.mrb[16].mxu0 }
 0x93a   :  { %v670_v22 = vrot.slane %v663_v21, 2  ;;  %v1955_v24 = vpop.f32.mrb[17].mxu0 }
 0x93b   :  { %v666_v25 = vpop.f32.mrb[18].mxu0 }
 0x93c   :  { %v672_v26 = vadd.f32 %v670_v22, %v2384_v9  ;;  %v1956_v27 = vpop.f32.mrb[19].mxu0 }
 0x93e   :  { %2142 = vtanh.f32 %v672_v26  ;;  %v1782_v9 = vmul.f32 -1.442695, %v672_v26 }
 0x93f   :  { %v714_v28 = vpop.f32.mrb[16].mxu1 }
 0x940   :  { %v1963_v31 = vpop.f32.mrb[17].mxu1 }
 0x941   :  { %v717_v32 = vpop.f32.mrb[18].mxu1  ;;  %v754_v33 = vpop.f32.mrb[20].mxu0 }
 0x942   :  { %v755_v35 = vadd.f32 %v754_v33, %v714_v28  ;;  %v1964_v37 = vpop.f32.mrb[19].mxu1  ;;  %v1971_v38 = vpop.f32.mrb[21].mxu0 }
 0x943   :  { %v757_v39 = vpop.f32.mrb[22].mxu0 }
 0x944   :  { %v760_v40 = vadd.f32 %v2444_v47, %v755_v35  ;;  %v1972_v41 = vpop.f32.mrb[23].mxu0 }
 0x946   :  { %2144 = vtanh.f32 %v760_v40  ;;  %v1783_v44 = vmul.f32 -1.442695, %v760_v40 }
 0x947   :  { %2146 = vpow2.f32 %v1782_v9 }
 0x948   :  { %v2143_v42 = vpop.eup %2142  ;;  %2148 = vpow2.f32 %v1783_v44 }
 0x949   :  { %773 = vrot.lane.b32.xlu0 %v2143_v42, %s2282_s15 }
 0x950   :  { %v2145_v43 = vpop.eup %2144 }
 0x951   :  { %797 = vrot.lane.b32.xlu1 %v2145_v43, %s2282_s15  ;;  %v2147_v45 = vpop.eup %2146 }
 0x952   :  { %v764_v46 = vadd.f32 1.0, %v2147_v45  ;;  %v2149_v48 = vpop.eup %2148 }
 0x953   :  { %v791_v49 = vadd.f32 1.0, %v2149_v48 }
 0x954   :  { %2150 = vrcp.f32 %v764_v46 }
 0x955   :  { %2152 = vrcp.f32 %v791_v49 }
 0x95e   :  { %v2151_v50 = vpop.eup %2150 }
 0x95f   :  { %v2153_v53 = vpop.eup %2152  ;;  %v771_v57 = vmul.f32 %v2151_v50, %v769_v56 }
 0x960   :  { %v795_v60 = vmul.f32 %v2153_v53, %v2498_v7 }
 0x9bb   :  { %v774_v51 = vpop.permute.xlu0 %773 }
 0x9bc   :  { %v776_v52 = vmul.f32 %v2151_v50, %v774_v51 }
 0x9be   :  { %778 = vrot.lane.b32.xlu0 %v776_v52, %s2287_s3 }
 0x9c3   :  { %v798_v54 = vpop.permute.xlu1 %797 }
 0x9c4   :  { %v800_v55 = vmul.f32 %v2153_v53, %v798_v54 }
 0x9c6   :  { %802 = vrot.lane.b32.xlu1 %v800_v55, %s2287_s3 }
 0xa30   :  { %v779_v58 = vpop.permute.xlu0 %778 }
 0xa31   :  { %v2537_v59 = vadd.f32 %v779_v58, %v771_v57 }
 0xa33   :  { %2154 = vtanh.f32 %v2537_v59 }
 0xa38   :  { %v803_v61 = vpop.permute.xlu1 %802 }
 0xa39   :  { %v2541_v62 = vadd.f32 %v803_v61, %v795_v60 }
 0xa3b   :  { %2156 = vtanh.f32 %v2541_v62 }
 0xa3d   :  { %v2155_v63 = vpop.eup %2154 }
 0xa3e   :  { %784 = vrot.lane.b32.xlu0 %v2155_v63, %s2282_s15 }
 0xa45   :  { %v2157_v1 = vpop.eup %2156 }
 0xa46   :  { %808 = vrot.lane.b32.xlu1 %v2157_v1, %s2282_s15 }
 0xab0   :  { %v785_v3 = vpop.permute.xlu0 %784 }
 0xab1   :  { %v787_v5 = vmul.f32 %v2151_v50, %v785_v3  ;;  %v963_v50 = vrot.slane %v2537_v59, 6 }
 0xab3   :  { %v818_v6 = vpack.c.bf16 %v787_v5, %v787_v5 }
 0xab5   :  { %v820_v8 = vrot.slane %v818_v6, 3 }
 0xab7   :  { %821 = vrot.lane.b32.xlu0 %v820_v8, %s2287_s3 }
 0xab8   :  { %v809_v10 = vpop.permute.xlu1 %808 }
 0xab9   :  { %v2547_v12 = vmul.f32 %v2153_v53, %v809_v10 }
 0xabb   :  { %v867_v7 = vpack.c.bf16 %v2547_v12, %v2547_v12 }
 0xabd   :  { %869 = vrot.lane.b32.xlu1 %v867_v7, %s2287_s3 }
 0xb29   :  { %v822_v13 = vpop.permute.xlu0 %821 }
 0xb2a   :  { %1978 = vmatmul.mubr.msk.bf16.vlgmr.msra.gmra.mrb[20].mxu1 %vm136_vm2, %v822_v13 }
 0xb2b   :  { %1990 = vmatpush3.bf16.msra.mxu1 %v2419_v34  ;;  %1993 = vmatprep.mubr.msk.bf16.mxu1 %vm2285_vm0, %v2284_v0 }
 0xb2c   :  { %1991 = vmatprep.subr.bf16.mxu1 %v2284_v0 }
 0xb2f   :  { %1992 = vmatpush3.bf16.msra.mxu1 %v2426_v36  ;;  %v870_v14 = vpop.permute.xlu1 %869 }
 0xb30   :  { %1986 = vmatmul.mubr.msk.bf16.vlgmr.msra.gmra.mrb[24].mxu0 %vm136_vm2, %v870_v14  ;;  %2005 = vmatprep.subr.bf16.mxu1 %v2284_v0 }
 0xb31   :  { %1998 = vmatpush3.bf16.msra.mxu0 %v2358_v2  ;;  %2001 = vmatprep.mubr.msk.bf16.mxu0 %vm2285_vm0, %v2284_v0 }
 0xb32   :  { %1994 = vmatmul.mubr.msk.bf16.vlgmr.msra.gmra.mrb[24].mxu1 %vm136_vm2, %v822_v13  ;;  %1999 = vmatprep.subr.bf16.mxu0 %v2284_v0 }
 0xb33   :  { %2006 = vmatpush3.bf16.msra.mxu1 %v2398_v29  ;;  %2009 = vmatprep.mubr.msk.bf16.mxu1 %vm2285_vm0, %v2284_v0 }
 0xb34   :  { %2007 = vmatprep.subr.bf16.mxu1 %v2284_v0 }
 0xb35   :  { %2000 = vmatpush3.bf16.msra.mxu0 %v2367_v4 }
 0xb36   :  { %2013 = vmatprep.subr.bf16.mxu0 %v2284_v0 }
 0xb37   :  { %2008 = vmatpush3.bf16.msra.mxu1 %v2405_v30 }
 0xb38   :  { %2021 = vmatprep.subr.bf16.mxu1 %v2284_v0 }
 0xbfd   :  { %v860_v16 = vpop.f32.mrb[20].mxu1 }
 0xbfe   :  { %v866_v17 = vadd.f32 %v860_v16, %v2386_v11  ;;  %v1979_v15 = vpop.f32.mrb[21].mxu1 }
 0xbff   :  { %v863_v19 = vpop.f32.mrb[22].mxu1 }
 0xc00   :  { %2158 = vtanh.f32 %v866_v17  ;;  %v1980_v20 = vpop.f32.mrb[23].mxu1  ;;  %v1788_v38 = vmul.f32 -1.442695, %v866_v17 }
 0xc03   :  { %v908_v21 = vpop.f32.mrb[24].mxu0 }
 0xc04   :  { %v1987_v22 = vpop.f32.mrb[25].mxu0 }
 0xc05   :  { %v911_v24 = vpop.f32.mrb[26].mxu0  ;;  %v948_v25 = vpop.f32.mrb[24].mxu1 }
 0xc06   :  { %v949_v26 = vadd.f32 %v948_v25, %v908_v21  ;;  %v1988_v27 = vpop.f32.mrb[27].mxu0  ;;  %v1995_v28 = vpop.f32.mrb[25].mxu1 }
 0xc07   :  { %v951_v31 = vpop.f32.mrb[26].mxu1 }
 0xc08   :  { %v954_v32 = vadd.f32 %v2444_v47, %v949_v26  ;;  %v1996_v33 = vpop.f32.mrb[27].mxu1 }
 0xc0a   :  { %v2159_v35 = vpop.eup %2158  ;;  %2160 = vtanh.f32 %v954_v32  ;;  %v1789_v39 = vmul.f32 -1.442695, %v954_v32 }
 0xc0b   :  { %967 = vrot.lane.b32.xlu0 %v2159_v35, %s2282_s15  ;;  %2162 = vpow2.f32 %v1788_v38 }
 0xc0c   :  { %2164 = vpow2.f32 %v1789_v39 }
 0xc14   :  { %v2161_v37 = vpop.eup %2160 }
 0xc15   :  { %991 = vrot.lane.b32.xlu1 %v2161_v37, %s2282_s15  ;;  %v2163_v40 = vpop.eup %2162 }
 0xc16   :  { %v958_v41 = vadd.f32 1.0, %v2163_v40  ;;  %v2165_v42 = vpop.eup %2164 }
 0xc17   :  { %v985_v43 = vadd.f32 1.0, %v2165_v42 }
 0xc18   :  { %2166 = vrcp.f32 %v958_v41 }
 0xc19   :  { %2168 = vrcp.f32 %v985_v43 }
 0xc22   :  { %v2167_v9 = vpop.eup %2166 }
 0xc23   :  { %v2169_v46 = vpop.eup %2168  ;;  %v965_v51 = vmul.f32 %v2167_v9, %v963_v50 }
 0xc24   :  { %v989_v54 = vmul.f32 %v2169_v46, %v2541_v62 }
 0xc7d   :  { %v968_v44 = vpop.permute.xlu0 %967 }
 0xc7e   :  { %v970_v45 = vmul.f32 %v2167_v9, %v968_v44 }
 0xc80   :  { %972 = vrot.lane.b32.xlu0 %v970_v45, %s2287_s3 }
 0xc87   :  { %v992_v48 = vpop.permute.xlu1 %991 }
 0xc88   :  { %v994_v49 = vmul.f32 %v2169_v46, %v992_v48 }
 0xc8a   :  { %996 = vrot.lane.b32.xlu1 %v994_v49, %s2287_s3 }
 0xcf2   :  { %v973_v52 = vpop.permute.xlu0 %972 }
 0xcf3   :  { %v2580_v53 = vadd.f32 %v973_v52, %v965_v51 }
 0xcf5   :  { %2170 = vtanh.f32 %v2580_v53  ;;  %v1159_v44 = vrot.slane %v2580_v53, 6 }
 0xcfc   :  { %v997_v55 = vpop.permute.xlu1 %996 }
 0xcfd   :  { %v2584_v56 = vadd.f32 %v997_v55, %v989_v54 }
 0xcff   :  { %v2171_v57 = vpop.eup %2170  ;;  %2172 = vtanh.f32 %v2584_v56 }
 0xd00   :  { %978 = vrot.lane.b32.xlu0 %v2171_v57, %s2282_s15 }
 0xd09   :  { %v2173_v58 = vpop.eup %2172 }
 0xd0a   :  { %1002 = vrot.lane.b32.xlu1 %v2173_v58, %s2282_s15 }
 0xd72   :  { %v979_v59 = vpop.permute.xlu0 %978 }
 0xd73   :  { %v981_v60 = vmul.f32 %v2167_v9, %v979_v59 }
 0xd75   :  { %v1012_v61 = vpack.c.bf16 %v981_v60, %v981_v60 }
 0xd77   :  { %1014 = vrot.lane.b32.xlu0 %v1012_v61, %s2287_s3 }
 0xd7c   :  { %v1003_v63 = vpop.permute.xlu1 %1002 }
 0xd7d   :  { %v2590_v1 = vmul.f32 %v2169_v46, %v1003_v63 }
 0xd7f   :  { %v1063_v62 = vpack.c.bf16 %v2590_v1, %v2590_v1 }
 0xd81   :  { %1065 = vrot.lane.b32.xlu1 %v1063_v62, %s2287_s3 }
 0xde9   :  { %v1015_v3 = vpop.permute.xlu0 %1014 }
 0xdea   :  { %2002 = vmatmul.mubr.msk.bf16.vlgmr.msra.gmra.mrb[28].mxu0 %vm136_vm2, %v1015_v3 }
 0xdeb   :  { %2014 = vmatpush3.bf16.msra.mxu0 %v2419_v34  ;;  %2017 = vmatprep.mubr.msk.bf16.mxu0 %vm2285_vm0, %v2284_v0 }
 0xdec   :  { %2015 = vmatprep.subr.bf16.mxu0 %v2284_v0 }
 0xdef   :  { %2016 = vmatpush3.bf16.msra.mxu0 %v2426_v36 }
 0xdf0   :  { %2029 = vmatprep.subr.bf16.mxu0 %v2284_v0 }
 0xdf2   :  { %2018 = vmatmul.mubr.msk.bf16.vlgmr.msra.gmra.mrb[32].mxu0 %vm136_vm2, %v1015_v3 }
 0xdf3   :  { %v1066_v5 = vpop.permute.xlu1 %1065  ;;  %2030 = vmatpush3.bf16.msra.mxu0 %v2398_v29  ;;  %2033 = vmatprep.mubr.msk.bf16.mxu0 %vm2285_vm0, %v2284_v0 }
 0xdf4   :  { %2010 = vmatmul.mubr.msk.bf16.vlgmr.msra.gmra.mrb[28].mxu1 %vm136_vm2, %v1066_v5  ;;  %2031 = vmatprep.subr.bf16.mxu0 %v2284_v0 }
 0xdf5   :  { %2022 = vmatpush3.bf16.msra.mxu1 %v2358_v2  ;;  %2025 = vmatprep.mubr.msk.bf16.mxu1 %vm2285_vm0, %v2284_v0 }
 0xdf6   :  { %2023 = vmatprep.subr.bf16.mxu1 %v2284_v0 }
 0xdf7   :  { %2032 = vmatpush3.bf16.msra.mxu0 %v2405_v30 }
 0xdf8   :  { %2045 = vmatprep.subr.bf16.mxu0 %v2284_v0 }
 0xdf9   :  { %2024 = vmatpush3.bf16.msra.mxu1 %v2367_v4 }
 0xdfa   :  { %2037 = vmatprep.subr.bf16.mxu1 %v2284_v0 }
 0xebd   :  { %v1053_v6 = vpop.f32.mrb[28].mxu0 }
 0xebe   :  { %v1060_v8 = vrot.slane %v1053_v6, 6  ;;  %v2003_v10 = vpop.f32.mrb[29].mxu0 }
 0xebf   :  { %v1056_v7 = vpop.f32.mrb[30].mxu0 }
 0xec0   :  { %v1062_v13 = vadd.f32 %v1060_v8, %v2386_v11  ;;  %v2004_v14 = vpop.f32.mrb[31].mxu0 }
 0xec2   :  { %2174 = vtanh.f32 %v1062_v13  ;;  %v1794_v31 = vmul.f32 -1.442695, %v1062_v13 }
 0xec5   :  { %v1144_v16 = vpop.f32.mrb[32].mxu0 }
 0xec6   :  { %v2019_v17 = vpop.f32.mrb[33].mxu0 }
 0xec7   :  { %v1104_v15 = vpop.f32.mrb[28].mxu1  ;;  %v1147_v19 = vpop.f32.mrb[34].mxu0 }
 0xec8   :  { %v1145_v20 = vadd.f32 %v1144_v16, %v1104_v15  ;;  %v2011_v21 = vpop.f32.mrb[29].mxu1  ;;  %v2020_v22 = vpop.f32.mrb[35].mxu0 }
 0xec9   :  { %v1107_v24 = vpop.f32.mrb[30].mxu1 }
 0xeca   :  { %v1150_v25 = vadd.f32 %v2444_v47, %v1145_v20  ;;  %v2012_v26 = vpop.f32.mrb[31].mxu1 }
 0xecc   :  { %v2175_v27 = vpop.eup %2174  ;;  %2176 = vtanh.f32 %v1150_v25  ;;  %v1795_v32 = vmul.f32 -1.442695, %v1150_v25 }
 0xecd   :  { %1163 = vrot.lane.b32.xlu0 %v2175_v27, %s2282_s15  ;;  %2178 = vpow2.f32 %v1794_v31 }
 0xece   :  { %2180 = vpow2.f32 %v1795_v32 }
 0xed6   :  { %v2177_v28 = vpop.eup %2176 }
 0xed7   :  { %1187 = vrot.lane.b32.xlu1 %v2177_v28, %s2282_s15  ;;  %v2179_v33 = vpop.eup %2178 }
 0xed8   :  { %v1154_v35 = vadd.f32 1.0, %v2179_v33  ;;  %v2181_v37 = vpop.eup %2180 }
 0xed9   :  { %v1181_v38 = vadd.f32 1.0, %v2181_v37 }
 0xeda   :  { %2182 = vrcp.f32 %v1154_v35 }
 0xedb   :  { %2184 = vrcp.f32 %v1181_v38 }
 0xee4   :  { %v2183_v39 = vpop.eup %2182 }
 0xee5   :  { %v2185_v42 = vpop.eup %2184  ;;  %v1161_v45 = vmul.f32 %v2183_v39, %v1159_v44 }
 0xee6   :  { %v1185_v49 = vmul.f32 %v2185_v42, %v2584_v56 }
 0xf3f   :  { %v1164_v40 = vpop.permute.xlu0 %1163 }
 0xf40   :  { %v1166_v41 = vmul.f32 %v2183_v39, %v1164_v40 }
 0xf42   :  { %1168 = vrot.lane.b32.xlu0 %v1166_v41, %s2287_s3 }
 0xf49   :  { %v1188_v43 = vpop.permute.xlu1 %1187 }
 0xf4a   :  { %v1190_v9 = vmul.f32 %v2185_v42, %v1188_v43 }
 0xf4c   :  { %1192 = vrot.lane.b32.xlu1 %v1190_v9, %s2287_s3 }
 0xfb4   :  { %v1169_v46 = vpop.permute.xlu0 %1168 }
 0xfb5   :  { %v2623_v48 = vadd.f32 %v1169_v46, %v1161_v45 }
 0xfb7   :  { %2186 = vtanh.f32 %v2623_v48  ;;  %v1356_v38 = vrot.slane %v2623_v48, 6 }
 0xfbe   :  { %v1193_v50 = vpop.permute.xlu1 %1192 }
 0xfbf   :  { %v2627_v51 = vadd.f32 %v1193_v50, %v1185_v49 }
 0xfc1   :  { %v2187_v52 = vpop.eup %2186  ;;  %2188 = vtanh.f32 %v2627_v51 }
 0xfc2   :  { %1174 = vrot.lane.b32.xlu0 %v2187_v52, %s2282_s15 }
 0xfcb   :  { %v2189_v54 = vpop.eup %2188 }
 0xfcc   :  { %1198 = vrot.lane.b32.xlu1 %v2189_v54, %s2282_s15 }
0x1034   :  { %v1175_v53 = vpop.permute.xlu0 %1174 }
0x1035   :  { %v1177_v55 = vmul.f32 %v2183_v39, %v1175_v53 }
0x1037   :  { %v1208_v57 = vpack.c.bf16 %v1177_v55, %v1177_v55 }
0x1039   :  { %v1210_v58 = vrot.slane %v1208_v57, 1  ;;  %v2230_v57 = vld [vmem:[%s2791_s5] sm:$0xff]  }
0x103b   :  { %1211 = vrot.lane.b32.xlu0 %v1210_v58, %s2287_s3  ;;  %v2231_v58 = vld [vmem:[%s2791_s5 + $0x8] sm:$0xff]  }
0x103e   :  { %v1199_v59 = vpop.permute.xlu1 %1198 }
0x103f   :  { %v2633_v60 = vmul.f32 %v2185_v42, %v1199_v59 }
0x1041   :  { %v1260_v56 = vpack.c.bf16 %v2633_v60, %v2633_v60 }
0x1043   :  { %1262 = vrot.lane.b32.xlu1 %v1260_v56, %s2287_s3 }
0x10ad   :  { %v1212_v61 = vpop.permute.xlu0 %1211 }
0x10ae   :  { %2026 = vmatmul.mubr.msk.bf16.vlgmr.msra.gmra.mrb[32].mxu1 %vm136_vm2, %v1212_v61 }
0x10af   :  { %2038 = vmatpush3.bf16.msra.mxu1 %v2419_v34  ;;  %2041 = vmatprep.mubr.msk.bf16.mxu1 %vm2285_vm0, %v2284_v0 }
0x10b0   :  { %2039 = vmatprep.subr.bf16.mxu1 %v2284_v0 }
0x10b3   :  { %2040 = vmatpush3.bf16.msra.mxu1 %v2426_v36 }
0x10b4   :  { %2053 = vmatprep.subr.bf16.mxu1 %v2284_v0 }
0x10b5   :  { %v1263_v63 = vpop.permute.xlu1 %1262 }
0x10b6   :  { %2034 = vmatmul.mubr.msk.bf16.vlgmr.msra.gmra.mrb[36].mxu0 %vm136_vm2, %v1263_v63  ;;  %2042 = vmatmul.mubr.msk.bf16.vlgmr.msra.gmra.mrb[36].mxu1 %vm136_vm2, %v1212_v61 }
0x10b7   :  { %2046 = vmatpush3.bf16.msra.mxu0 %v2358_v2  ;;  %2054 = vmatpush3.bf16.msra.mxu1 %v2398_v29 }
0x10b8   :  { %2047 = vmatprep.subr.bf16.mxu0 %v2284_v0  ;;  %2049 = vmatprep.mubr.msk.bf16.mxu0 %vm2285_vm0, %v2284_v0 }
0x10b9   :  { %2055 = vmatprep.subr.bf16.mxu1 %v2284_v0  ;;  %2057 = vmatprep.mubr.msk.bf16.mxu1 %vm2285_vm0, %v2284_v0 }
0x10bb   :  { %2048 = vmatpush3.bf16.msra.mxu0 %v2367_v4  ;;  %2056 = vmatpush3.bf16.msra.mxu1 %v2405_v30 }
0x10bc   :  { %2061 = vmatprep.subr.bf16.mxu0 %v2284_v0  ;;  %2069 = vmatprep.subr.bf16.mxu1 %v2284_v0 }
0x1181   :  { %v1250_v2 = vpop.f32.mrb[32].mxu1 }
0x1182   :  { %v1257_v29 = vrot.slane %v1250_v2, 4  ;;  %v2027_v62 = vpop.f32.mrb[33].mxu1 }
0x1183   :  { %v1253_v3 = vpop.f32.mrb[34].mxu1 }
0x1184   :  { %v1259_v5 = vadd.f32 %v1257_v29, %v2386_v11  ;;  %v2028_v6 = vpop.f32.mrb[35].mxu1 }
0x1186   :  { %2190 = vtanh.f32 %v1259_v5  ;;  %v1800_v21 = vmul.f32 -1.442695, %v1259_v5 }
0x1189   :  { %v1301_v8 = vpop.f32.mrb[36].mxu0  ;;  %v1341_v10 = vpop.f32.mrb[36].mxu1 }
0x118a   :  { %v1342_v7 = vadd.f32 %v1341_v10, %v1301_v8  ;;  %v2035_v13 = vpop.f32.mrb[37].mxu0  ;;  %v2043_v14 = vpop.f32.mrb[37].mxu1 }
0x118b   :  { %v1304_v4 = vpop.f32.mrb[38].mxu0  ;;  %v1344_v16 = vpop.f32.mrb[38].mxu1 }
0x118c   :  { %v1347_v30 = vadd.f32 %v2444_v47, %v1342_v7  ;;  %v2036_v17 = vpop.f32.mrb[39].mxu0  ;;  %v2044_v15 = vpop.f32.mrb[39].mxu1 }
0x118e   :  { %2192 = vtanh.f32 %v1347_v30  ;;  %v1801_v22 = vmul.f32 -1.442695, %v1347_v30 }
0x118f   :  { %2194 = vpow2.f32 %v1800_v21 }
0x1190   :  { %v2191_v19 = vpop.eup %2190  ;;  %2196 = vpow2.f32 %v1801_v22 }
0x1191   :  { %1360 = vrot.lane.b32.xlu0 %v2191_v19, %s2282_s15 }
0x1198   :  { %v2193_v20 = vpop.eup %2192 }
0x1199   :  { %1384 = vrot.lane.b32.xlu1 %v2193_v20, %s2282_s15  ;;  %v2195_v24 = vpop.eup %2194 }
0x119a   :  { %v1351_v25 = vadd.f32 1.0, %v2195_v24  ;;  %v2197_v26 = vpop.eup %2196 }
0x119b   :  { %v1378_v27 = vadd.f32 1.0, %v2197_v26 }
0x119c   :  { %2198 = vrcp.f32 %v1351_v25 }
0x119d   :  { %2200 = vrcp.f32 %v1378_v27 }
0x11a6   :  { %v2199_v28 = vpop.eup %2198 }
0x11a7   :  { %v2201_v33 = vpop.eup %2200  ;;  %v1358_v39 = vmul.f32 %v2199_v28, %v1356_v38 }
0x11a8   :  { %v1382_v42 = vmul.f32 %v2201_v33, %v2627_v51 }
0x1203   :  { %v1361_v31 = vpop.permute.xlu0 %1360 }
0x1204   :  { %v1363_v32 = vmul.f32 %v2199_v28, %v1361_v31 }
0x1206   :  { %1365 = vrot.lane.b32.xlu0 %v1363_v32, %s2287_s3 }
0x120b   :  { %v1385_v35 = vpop.permute.xlu1 %1384 }
0x120c   :  { %v1387_v37 = vmul.f32 %v2201_v33, %v1385_v35 }
0x120e   :  { %1389 = vrot.lane.b32.xlu1 %v1387_v37, %s2287_s3 }
0x1278   :  { %v1366_v40 = vpop.permute.xlu0 %1365 }
0x1279   :  { %v2666_v41 = vadd.f32 %v1366_v40, %v1358_v39 }
0x127b   :  { %2202 = vtanh.f32 %v2666_v41  ;;  %v1553_v25 = vrot.slane %v2666_v41, 6 }
0x1280   :  { %v1390_v43 = vpop.permute.xlu1 %1389 }
0x1281   :  { %v2670_v9 = vadd.f32 %v1390_v43, %v1382_v42 }
0x1283   :  { %2204 = vtanh.f32 %v2670_v9 }
0x1285   :  { %v2203_v44 = vpop.eup %2202 }
0x1286   :  { %1371 = vrot.lane.b32.xlu0 %v2203_v44, %s2282_s15 }
0x128d   :  { %v2205_v45 = vpop.eup %2204 }
0x128e   :  { %1395 = vrot.lane.b32.xlu1 %v2205_v45, %s2282_s15 }
0x12f8   :  { %v1372_v46 = vpop.permute.xlu0 %1371 }
0x12f9   :  { %v1374_v48 = vmul.f32 %v2199_v28, %v1372_v46 }
0x12fb   :  { %v1405_v49 = vpack.c.bf16 %v1374_v48, %v1374_v48 }
0x12fd   :  { %v1407_v50 = vrot.slane %v1405_v49, 2 }
0x12ff   :  { %1408 = vrot.lane.b32.xlu0 %v1407_v50, %s2287_s3 }
0x1300   :  { %v1396_v52 = vpop.permute.xlu1 %1395 }
0x1301   :  { %v2676_v54 = vmul.f32 %v2201_v33, %v1396_v52 }
0x1303   :  { %v1457_v51 = vpack.c.bf16 %v2676_v54, %v2676_v54 }
0x1305   :  { %1459 = vrot.lane.b32.xlu1 %v1457_v51, %s2287_s3 }
0x1371   :  { %v1409_v53 = vpop.permute.xlu0 %1408 }
0x1372   :  { %2050 = vmatmul.mubr.msk.bf16.vlgmr.msra.gmra.mrb[40].mxu0 %vm136_vm2, %v1409_v53 }
0x1373   :  { %2062 = vmatpush3.bf16.msra.mxu0 %v2419_v34  ;;  %2065 = vmatprep.mubr.msk.bf16.mxu0 %vm2285_vm0, %v2284_v0 }
0x1374   :  { %2063 = vmatprep.subr.bf16.mxu0 %v2284_v0 }
0x1377   :  { %2064 = vmatpush3.bf16.msra.mxu0 %v2426_v36  ;;  %v1460_v55 = vpop.permute.xlu1 %1459 }
0x1378   :  { %2058 = vmatmul.mubr.msk.bf16.vlgmr.msra.gmra.mrb[40].mxu1 %vm136_vm2, %v1460_v55  ;;  %2077 = vmatprep.subr.bf16.mxu0 %v2284_v0 }
0x1379   :  { %2070 = vmatpush3.bf16.msra.mxu1 %v2230_v57  ;;  %2073 = vmatprep.mubr.msk.bf16.mxu1 %vm2285_vm0, %v2284_v0  ;;  %v2232_v57 = vld [vmem:[%s2792_s6] ss:$0 sm:$0xff] }
0x137a   :  { %2066 = vmatmul.mubr.msk.bf16.vlgmr.msra.gmra.mrb[44].mxu0 %vm136_vm2, %v1409_v53  ;;  %2071 = vmatprep.subr.bf16.mxu1 %v2284_v0 }
0x137b   :  { %2078 = vmatpush3.bf16.msra.mxu0 %v2419_v34  ;;  %2081 = vmatprep.mubr.msk.bf16.mxu0 %vm2285_vm0, %v2284_v0 }
0x137c   :  { %2079 = vmatprep.subr.bf16.mxu0 %v2284_v0 }
0x137d   :  { %2072 = vmatpush3.bf16.msra.mxu1 %v2231_v58 }
0x137f   :  { %2080 = vmatpush3.bf16.msra.mxu0 %v2426_v36 }
0x1445   :  { %v1447_v59 = vpop.f32.mrb[40].mxu0 }
0x1446   :  { %v1454_v56 = vrot.slane %v1447_v59, 2  ;;  %v2051_v61 = vpop.f32.mrb[41].mxu0 }
0x1447   :  { %v1450_v63 = vpop.f32.mrb[42].mxu0 }
0x1448   :  { %v1456_v2 = vadd.f32 %v1454_v56, %v2386_v11  ;;  %v2052_v29 = vpop.f32.mrb[43].mxu0 }
0x144a   :  { %2206 = vtanh.f32 %v1456_v2  ;;  %v1806_v11 = vmul.f32 -1.442695, %v1456_v2 }
0x144b   :  { %v1498_v34 = vpop.f32.mrb[40].mxu1 }
0x144c   :  { %v2059_v62 = vpop.f32.mrb[41].mxu1 }
0x144d   :  { %v1501_v3 = vpop.f32.mrb[42].mxu1  ;;  %v1538_v5 = vpop.f32.mrb[44].mxu0 }
0x144e   :  { %v1539_v0 = vadd.f32 %v1538_v5, %v1498_v34  ;;  %v2060_v6 = vpop.f32.mrb[43].mxu1  ;;  %v2067_v8 = vpop.f32.mrb[45].mxu0 }
0x144f   :  { %v1541_v10 = vpop.f32.mrb[46].mxu0 }
0x1450   :  { %v1544_v7 = vadd.f32 %v2444_v47, %v1539_v0  ;;  %v2068_v13 = vpop.f32.mrb[47].mxu0 }
0x1452   :  { %2208 = vtanh.f32 %v1544_v7  ;;  %v1807_v4 = vmul.f32 -1.442695, %v1544_v7 }
0x1453   :  { %2210 = vpow2.f32 %v1806_v11 }
0x1454   :  { %v2207_v36 = vpop.eup %2206  ;;  %2212 = vpow2.f32 %v1807_v4 }
0x1455   :  { %1557 = vrot.lane.b32.xlu0 %v2207_v36, %s2282_s15 }
0x145c   :  { %v2209_v14 = vpop.eup %2208 }
0x145d   :  { %1581 = vrot.lane.b32.xlu1 %v2209_v14, %s2282_s15  ;;  %v2211_v16 = vpop.eup %2210 }
0x145e   :  { %v1548_v30 = vadd.f32 1.0, %v2211_v16  ;;  %v2213_v17 = vpop.eup %2212 }
0x145f   :  { %v1575_v15 = vadd.f32 1.0, %v2213_v17 }
0x1460   :  { %2214 = vrcp.f32 %v1548_v30 }
0x1461   :  { %2216 = vrcp.f32 %v1575_v15 }
0x146a   :  { %v2215_v19 = vpop.eup %2214 }
0x146b   :  { %v2217_v21 = vpop.eup %2216  ;;  %v1555_v26 = vmul.f32 %v2215_v19, %v1553_v25 }
0x146c   :  { %v1579_v31 = vmul.f32 %v2217_v21, %v2670_v9 }
0x14c7   :  { %v1558_v47 = vpop.permute.xlu0 %1557 }
0x14c8   :  { %v1560_v20 = vmul.f32 %v2215_v19, %v1558_v47 }
0x14ca   :  { %1562 = vrot.lane.b32.xlu0 %v1560_v20, %s2287_s3 }
0x14cf   :  { %v1582_v22 = vpop.permute.xlu1 %1581 }
0x14d0   :  { %v1584_v24 = vmul.f32 %v2217_v21, %v1582_v22 }
0x14d2   :  { %1586 = vrot.lane.b32.xlu1 %v1584_v24, %s2287_s3 }
0x153c   :  { %v1563_v27 = vpop.permute.xlu0 %1562 }
0x153d   :  { %v1565_v28 = vadd.f32 %v1563_v27, %v1555_v26 }
0x153f   :  { %2218 = vtanh.f32 %v1565_v28 }
0x1544   :  { %v1587_v32 = vpop.permute.xlu1 %1586 }
0x1545   :  { %v1589_v33 = vadd.f32 %v1587_v32, %v1579_v31 }
0x1547   :  { %2220 = vtanh.f32 %v1589_v33 }
0x1549   :  { %v2219_v35 = vpop.eup %2218 }
0x154a   :  { %1568 = vrot.lane.b32.xlu0 %v2219_v35, %s2282_s15 }
0x1551   :  { %v2221_v37 = vpop.eup %2220 }
0x1552   :  { %1592 = vrot.lane.b32.xlu1 %v2221_v37, %s2282_s15 }
0x15bc   :  { %v1569_v38 = vpop.permute.xlu0 %1568 }
0x15bd   :  { %v1571_v39 = vmul.f32 %v2215_v19, %v1569_v38 }
0x15bf   :  { %v1602_v40 = vpack.c.bf16 %v1571_v39, %v1571_v39 }
0x15c1   :  { %v1651_v42 = vrot.slane %v1602_v40, 3 }
0x15c3   :  { %1652 = vrot.lane.b32.xlu1 %v1651_v42, %s2287_s3 }
0x15c4   :  { %v1593_v41 = vpop.permute.xlu1 %1592 }
0x15c5   :  { %v1595_v43 = vmul.f32 %v2217_v21, %v1593_v41 }
0x15c7   :  { %v1603_v44 = vpack.c.bf16 %v1595_v43, %v1595_v43 }
0x15c9   :  { %1605 = vrot.lane.b32.xlu0 %v1603_v44, %s2287_s3 }
0x1635   :  { %v1653_v9 = vpop.permute.xlu1 %1652 }
0x1636   :  { %2082 = vmatmul.mubr.msk.bf16.vlgmr.msra.gmra.mrb[48].mxu0 %vm136_vm2, %v1653_v9 }
0x163b   :  { %v1606_v45 = vpop.permute.xlu0 %1605 }
0x163c   :  { %2074 = vmatmul.mubr.msk.bf16.vlgmr.msra.gmra.mrb[44].mxu1 %vm136_vm2, %v1606_v45 }
0x1709   :  { %v1691_v46 = vpop.f32.mrb[48].mxu0 }
0x170a   :  { %v2083_v48 = vpop.f32.mrb[49].mxu0 }
0x170b   :  { %v1694_v49 = vpop.f32.mrb[50].mxu0 }
0x170c   :  { %v2084_v50 = vpop.f32.mrb[51].mxu0 }
0x170f   :  { %v1644_v52 = vpop.f32.mrb[44].mxu1 }
0x1710   :  { %v1692_v51 = vadd.f32 %v1691_v46, %v1644_v52  ;;  %v2075_v53 = vpop.f32.mrb[45].mxu1 }
0x1711   :  { %v1647_v55 = vpop.f32.mrb[46].mxu1 }
0x1712   :  { %v1697_v58 = vadd.f32 %v2232_v57, %v1692_v51  ;;  %v2076_v59 = vpop.f32.mrb[47].mxu1 }
0x1714   :  { %2222 = vtanh.f32 %v1697_v58  ;;  %v1811_v61 = vmul.f32 -1.442695, %v1697_v58 }
0x1716   :  { %2224 = vpow2.f32 %v1811_v61 }
0x171e   :  { %v2223_v56 = vpop.eup %2222 }
0x171f   :  { %1707 = vrot.lane.b32.xlu0 %v2223_v56, %s2282_s15 }
0x1720   :  { %v2225_v63 = vpop.eup %2224 }
0x1721   :  { %v1701_v2 = vadd.f32 1.0, %v2225_v63 }
0x1723   :  { %2226 = vrcp.f32 %v1701_v2 }
0x172d   :  { %v2227_v29 = vpop.eup %2226 }
0x172e   :  { %v1705_v3 = vmul.f32 %v2227_v29, %v1589_v33 }
0x1791   :  { %v1708_v34 = vpop.permute.xlu0 %1707 }
0x1792   :  { %v1710_v62 = vmul.f32 %v2227_v29, %v1708_v34 }
0x1794   :  { %1712 = vrot.lane.b32.xlu1 %v1710_v62, %s2287_s3 }
0x1798   :  { %419 = vrot.lane.b32.xlu1 %v2461_v23, %s2287_s3 }
0x179c   :  { %813 = vrot.lane.b32.xlu1 %v2547_v12, %s2287_s3 }
0x17a0   :  { %1203 = vrot.lane.b32.xlu1 %v2633_v60, %s2287_s3 }
0x1806   :  { %v1713_v5 = vpop.permute.xlu1 %1712 }
0x1807   :  { %v1715_v0 = vadd.f32 %v1713_v5, %v1705_v3 }
0x1809   :  { %2228 = vtanh.f32 %v1715_v0 }
0x180a   :  { %v420_v6 = vpop.permute.xlu1 %419 }
0x180b   :  { %423 = vst.msk [vmem:[%s2793_s7] sm:$0x3] %vm422_vm3, %v420_v6 }
0x180e   :  { %v814_v8 = vpop.permute.xlu1 %813 }
0x180f   :  { %1784 = vst.msk [vmem:[%s2793_s7 + $0x4] sm:$0x3] %vm422_vm3, %v814_v8 }
0x1812   :  { %v1204_v23 = vpop.permute.xlu1 %1203 }
0x1813   :  { %v2229_v12 = vpop.eup %2228  ;;  %1796 = vst.msk [vmem:[%s2793_s7 + $0x8] sm:$0x3] %vm422_vm3, %v1204_v23 }
0x1814   :  { %1718 = vrot.lane.b32.xlu0 %v2229_v12, %s2282_s15 }
0x1818   :  { %1729 = vrot.lane.b32.xlu0 %v1571_v39, %s2287_s3 }
0x181c   :  { %616 = vrot.lane.b32.xlu0 %v2504_v18, %s2287_s3 }
0x1820   :  { %1007 = vrot.lane.b32.xlu0 %v2590_v1, %s2287_s3 }
0x1824   :  { %1400 = vrot.lane.b32.xlu0 %v2676_v54, %s2287_s3 }
0x1886   :  { %v1719_v60 = vpop.permute.xlu0 %1718 }
0x1887   :  { %v1721_v10 = vmul.f32 %v2227_v29, %v1719_v60 }
0x1889   :  { %1723 = vrot.lane.b32.xlu1 %v1721_v10, %s2287_s3 }
0x188a   :  { %v1730_v7 = vpop.permute.xlu0 %1729 }
0x188b   :  { %1733 = vst.msk [vmem:[#allocation5 - $0x6] sm:$0xc0] %vm1732_vm4, %v1730_v7 }
0x188d   :  { %1597 = vrot.lane.b32.xlu1 %v1595_v43, %s2287_s3 }
0x188e   :  { %v617_v13 = vpop.permute.xlu0 %616 }
0x188f   :  { %1778 = vst.msk [vmem:[%s2793_s7 + $0x2] sm:$0x3] %vm422_vm3, %v617_v13 }
0x1892   :  { %v1008_v18 = vpop.permute.xlu0 %1007 }
0x1893   :  { %1790 = vst.msk [vmem:[%s2793_s7 + $0x6] sm:$0x3] %vm422_vm3, %v1008_v18 }
0x1896   :  { %v1401_v1 = vpop.permute.xlu0 %1400 }
0x1897   :  { %1802 = vst.msk [vmem:[%s2793_s7 + $0xa] sm:$0x3] %vm422_vm3, %v1401_v1 }
0x18fb   :  { %v1724_v54 = vpop.permute.xlu1 %1723 }
0x18fc   :  { %1812 = vst.msk [vmem:[%s2793_s7 + $0xe] sm:$0x3] %vm422_vm3, %v1724_v54  ;;  %1735 = vst.msk [vmem:[#allocation5 + $0x2] sm:$0x3] %vm422_vm3, %v1724_v54 }
0x18fd   :  { %2266 = shalt.err (!%p2263_p12)
}
0x18fe   :  { %s2267_s9 = scalar_lea.hbm %s2794_s8, 64 }
0x18ff   :  { %p2268_p13 = scmp.ne.s32.totalorder %s2794_s8, %s2267_s9  ;;  %p2271_p0 = scmp.lt.u32.totalorder %s2267_s9, %s2794_s8 }
0x1901   :  { %p2273_p1 = pnand %p2271_p0, %p2268_p13 }
0x1903   :  { %2276 = shalt.err (!%p2273_p1)
}
0x1904   :  { %s2289_s13 = smov 2   ;;  %v1598_v36 = vpop.permute.xlu1 %1597 }
0x1905   :  { %1749 = dma.vmem_to_hbm [thread:$0]  %s1744_s25, 64, %s2794_s8, [#allocation4], %s2287_s3, %s2287_s3, %s2289_s13  }
0x1906   :  { %1808 = vst.msk [vmem:[%s2793_s7 + $0xc] sm:$0x3] %vm422_vm3, %v1598_v36 }
0x1907   :  { %2279 = dma.done.wait [#allocation4], 64  }
0x1908   :  { %2280 = vsyncadd [#allocation4], 4294967232 }
0x1909   :  { %1755 = vsyncpa [#allocation3], 1 }
0x190a   :  { %1756 = vsyncpa [#allocation4], 1 }

</bundles_post_ra>
